<compile_context>
chip_gen: v6e
topology: v6e:2x2x1
jax: 0.10.0
libtpu: 0.0.40
codegen_flags: <defaults>
</compile_context>

<pallas_src>
import jax
import jax.numpy as jnp
import numpy as np
from jax.experimental import pallas as pl
from jax.experimental.pallas import tpu as pltpu


def _fused_kernel(x1_ref, w1_ref, s1_ref, b1_ref, w2_ref, s2_ref, b2_ref,
                  o_ref, h1p_ref):
    # x1_ref : (1, H*W, 9*Cin)   bf16  channel-concatenated 3x3 taps of the input
    # w1_ref : (9*Cin, Cmid)     bf16
    # s1/b1  : (1, Cmid)         f32   folded BatchNorm scale / bias (eval mode)
    # w2_ref : (9*Cmid, Cmid)    bf16
    # s2/b2  : (1, Cmid)         f32
    # o_ref  : (1, H*W, Cmid)    f32
    # h1p_ref: (H+2, W+2, Cmid)  f32   VMEM scratch for zero-padded block-1 output
    hp, wp, cmid = h1p_ref.shape
    h, w = hp - 2, wp - 2
    hw = h * w

    # ---- res_block1: one K=9*Cin bf16 MXU matmul (f32 acc) + folded BN + ReLU ----
    y1 = jnp.dot(x1_ref[0], w1_ref[...], preferred_element_type=jnp.float32)
    y1 = jnp.maximum(y1 * s1_ref[...] + b1_ref[...], 0.0)
    # Round h1 to bf16 (block-2 MXU operand precision) and keep it resident in
    # VMEM with the 'same' zero-padding ring already in place.
    y1 = y1.astype(jnp.bfloat16).astype(jnp.float32)
    h1p_ref[...] = jnp.zeros_like(h1p_ref)
    h1p_ref[pl.ds(1, h), pl.ds(1, w), :] = y1.reshape(h, w, cmid)

    # ---- res_block2: 9 shifted taps straight out of VMEM, folded into K=9*Cmid ----
    taps = [h1p_ref[pl.ds(dy, h), pl.ds(dx, w), :]
            .reshape(hw, cmid).astype(jnp.bfloat16)
            for dy in range(3) for dx in range(3)]
    x2 = jnp.concatenate(taps, axis=-1)                    # (H*W, 9*Cmid) bf16
    y2 = jnp.dot(x2, w2_ref[...], preferred_element_type=jnp.float32)
    y2 = jnp.maximum(y2 * s2_ref[...] + b2_ref[...], 0.0)
    o_ref[...] = y2[None].astype(o_ref.dtype)


def _fold_bn(p, eps=1e-5):
    scale = p["gamma"] / jnp.sqrt(p["var"] + eps)          # (Cout,)
    bias = p["beta"] + (p["b"] - p["mean"]) * scale        # (Cout,)
    return scale.astype(jnp.float32), bias.astype(jnp.float32)


def generator_forward(x_nchw, p1, p2):
    # TODO(synk): the reference PyTorch forward is truncated after
    # `h1 = self.res_block`; we assume sequential res_block1 -> res_block2
    # (no residual add is defined in the truncated source).
    x = jnp.transpose(x_nchw, (0, 2, 3, 1)).astype(jnp.float32)   # NCHW -> NHWC
    n, h, w, cin = x.shape
    cmid = p1["w"].shape[-1]
    hw = h * w

    # Block-1 taps, channel-concatenated so the lane dim is 9*Cin (pads to 128
    # once instead of Cin=6 padded to 128 nine times); bf16 for DMA + MXU.
    xp = jnp.pad(x, ((0, 0), (1, 1), (1, 1), (0, 0)))
    x_cat = jnp.concatenate(
        [xp[:, dy:dy + h, dx:dx + w, :] for dy in range(3) for dx in range(3)],
        axis=-1).reshape(n, hw, 9 * cin).astype(jnp.bfloat16)

    w1 = p1["w"].reshape(9 * cin, cmid).astype(jnp.bfloat16)   # HWIO -> (9*Cin, Cout)
    w2 = p2["w"].reshape(9 * cmid, cmid).astype(jnp.bfloat16)  # (1152, 128)
    s1, b1 = _fold_bn(p1)
    s2, b2 = _fold_bn(p2)

    out = pl.pallas_call(
        _fused_kernel,
        out_shape=jax.ShapeDtypeStruct((n, hw, cmid), jnp.float32),
        grid=(n,),
        in_specs=[
            pl.BlockSpec((1, hw, 9 * cin), lambda i: (i, 0, 0)),
            pl.BlockSpec((9 * cin, cmid), lambda i: (0, 0)),
            pl.BlockSpec((1, cmid), lambda i: (0, 0)),
            pl.BlockSpec((1, cmid), lambda i: (0, 0)),
            pl.BlockSpec((9 * cmid, cmid), lambda i: (0, 0)),
            pl.BlockSpec((1, cmid), lambda i: (0, 0)),
            pl.BlockSpec((1, cmid), lambda i: (0, 0)),
        ],
        out_specs=pl.BlockSpec((1, hw, cmid), lambda i: (i, 0, 0)),
        scratch_shapes=[pltpu.VMEM((h + 2, w + 2, cmid), jnp.float32)],
        compiler_params=pltpu.CompilerParams(
            dimension_semantics=("parallel",),
            vmem_limit_bytes=32 * 1024 * 1024),
    )(x_cat, w1, s1[None, :], b1[None, :], w2, s2[None, :], b2[None, :])
    return jnp.transpose(out.reshape(n, h, w, cmid), (0, 3, 1, 2))  # NHWC -> NCHW


# ----- pure-JAX reference (mirrors the kernel's bf16 operand rounding) -----
def _bf16_round(a):
    return a.astype(jnp.bfloat16).astype(jnp.float32)


def _ref_block(x_nhwc, p, eps=1e-5):
    y = jax.lax.conv_general_dilated(
        _bf16_round(x_nhwc), _bf16_round(p["w"]), (1, 1), "SAME",
        dimension_numbers=("NHWC", "HWIO", "NHWC"),
        precision=jax.lax.Precision.HIGHEST) + p["b"]
    y = (y - p["mean"]) / jnp.sqrt(p["var"] + eps) * p["gamma"] + p["beta"]
    return jnp.maximum(y, 0.0)


def ref_forward(x_nchw, p1, p2):
    x = jnp.transpose(x_nchw, (0, 2, 3, 1))
    h1 = _ref_block(x, p1)
    h2 = _ref_block(h1, p2)        # _ref_block rounds its input to bf16, like the kernel
    return jnp.transpose(h2, (0, 3, 1, 2))


def make_block_params(key, cin, cout):
    ks = jax.random.split(key, 6)
    return dict(
        w=jax.random.normal(ks[0], (3, 3, cin, cout), jnp.float32) * 0.05,  # HWIO
        b=jax.random.normal(ks[1], (cout,), jnp.float32) * 0.05,
        gamma=1.0 + 0.1 * jax.random.normal(ks[2], (cout,), jnp.float32),
        beta=0.1 * jax.random.normal(ks[3], (cout,), jnp.float32),
        mean=0.1 * jax.random.normal(ks[4], (cout,), jnp.float32),
        var=jnp.abs(jax.random.normal(ks[5], (cout,), jnp.float32)) + 0.5,
    )


if __name__ == "__main__":
    key = jax.random.PRNGKey(0)
    k_x, k_p1, k_p2 = jax.random.split(key, 3)

    N, Cin, H, W = 2, 6, 16, 16
    Cmid = 128

    x = jax.random.normal(k_x, (N, Cin, H, W), jnp.float32)  # NCHW, like PyTorch
    p1 = make_block_params(k_p1, Cin, Cmid)
    p2 = make_block_params(k_p2, Cmid, Cmid)

    fwd = jax.jit(generator_forward)
    out = jax.block_until_ready(fwd(x, p1, p2))

    ref = jax.block_until_ready(ref_forward(x, p1, p2))
    assert out.shape == (N, Cmid, H, W)
    np.testing.assert_allclose(np.asarray(out), np.asarray(ref),
                               rtol=5e-3, atol=5e-3)
    print("KERNEL_OK")
</pallas_src>

<mosaic_0001>
module attributes {stable_mosaic.version = 11 : i64} {
  func.func @_fused_kernel(%arg0: i32, %arg1: memref<1x256x54xbf16, #tpu.memory_space<vmem>>, %arg2: memref<54x128xbf16, #tpu.memory_space<vmem>>, %arg3: memref<1x128xf32, #tpu.memory_space<vmem>>, %arg4: memref<1x128xf32, #tpu.memory_space<vmem>>, %arg5: memref<1152x128xbf16, #tpu.memory_space<vmem>>, %arg6: memref<1x128xf32, #tpu.memory_space<vmem>>, %arg7: memref<1x128xf32, #tpu.memory_space<vmem>>, %arg8: memref<1x256x128xf32, #tpu.memory_space<vmem>>, %arg9: memref<18x18x128xf32, #tpu.memory_space<vmem>>) attributes {dimension_semantics = [#tpu.dimension_semantics<parallel>], iteration_bounds = array<i64: 2>, scalar_prefetch = 0 : i64, scratch_operands = 1 : i64, tpu.core_type = #tpu.core_type<tc>, window_params = [{transform_indices = @transform_0, window_bounds = array<i64: 1, 256, 54>}, {pipeline_mode = #tpu.pipeline_mode<synchronous>, transform_indices = @transform_1, window_bounds = array<i64: 54, 128>}, {pipeline_mode = #tpu.pipeline_mode<synchronous>, transform_indices = @transform_2, window_bounds = array<i64: 1, 128>}, {pipeline_mode = #tpu.pipeline_mode<synchronous>, transform_indices = @transform_3, window_bounds = array<i64: 1, 128>}, {pipeline_mode = #tpu.pipeline_mode<synchronous>, transform_indices = @transform_4, window_bounds = array<i64: 1152, 128>}, {pipeline_mode = #tpu.pipeline_mode<synchronous>, transform_indices = @transform_5, window_bounds = array<i64: 1, 128>}, {pipeline_mode = #tpu.pipeline_mode<synchronous>, transform_indices = @transform_6, window_bounds = array<i64: 1, 128>}, {transform_indices = @transform_7, window_bounds = array<i64: 1, 256, 128>}]} {
    %c0 = arith.constant 0 : index
    %c0_0 = arith.constant 0 : index
    %c0_1 = arith.constant 0 : index
    %0 = vector.load %arg1[%c0, %c0_0, %c0_1] : memref<1x256x54xbf16, #tpu.memory_space<vmem>>, vector<1x256x54xbf16>
    %1 = vector.shape_cast %0 : vector<1x256x54xbf16> to vector<256x54xbf16>
    %c0_2 = arith.constant 0 : index
    %c0_3 = arith.constant 0 : index
    %2 = vector.load %arg2[%c0_2, %c0_3] : memref<54x128xbf16, #tpu.memory_space<vmem>>, vector<54x128xbf16>
    %cst = arith.constant dense<0.000000e+00> : vector<256x128xf32>
    %3 = tpu.matmul %1, %2, %cst {dimension_numbers = #tpu.dot_dimension_numbers<[1], [0], [0], [1], [0, 0, 1, 1], [], []>} : vector<256x54xbf16>, vector<54x128xbf16>, vector<256x128xf32> -> vector<256x128xf32>
    %c0_4 = arith.constant 0 : index
    %c0_5 = arith.constant 0 : index
    %4 = vector.load %arg3[%c0_4, %c0_5] : memref<1x128xf32, #tpu.memory_space<vmem>>, vector<1x128xf32>
    %5 = vector.broadcast %4 : vector<1x128xf32> to vector<256x128xf32>
    %6 = arith.mulf %3, %5 : vector<256x128xf32>
    %c0_6 = arith.constant 0 : index
    %c0_7 = arith.constant 0 : index
    %7 = vector.load %arg4[%c0_6, %c0_7] : memref<1x128xf32, #tpu.memory_space<vmem>>, vector<1x128xf32>
    %8 = vector.broadcast %7 : vector<1x128xf32> to vector<256x128xf32>
    %9 = arith.addf %6, %8 : vector<256x128xf32>
    %cst_8 = arith.constant 0.000000e+00 : f32
    %10 = vector.broadcast %cst_8 : f32 to vector<256x128xf32>
    %11 = arith.maximumf %9, %10 : vector<256x128xf32>
    %12 = arith.truncf %11 : vector<256x128xf32> to vector<256x128xbf16>
    %13 = arith.extf %12 : vector<256x128xbf16> to vector<256x128xf32>
    %cst_9 = arith.constant 0.000000e+00 : f32
    %14 = vector.broadcast %cst_9 : f32 to vector<18x18x128xf32>
    %c0_10 = arith.constant 0 : index
    %c0_11 = arith.constant 0 : index
    %c0_12 = arith.constant 0 : index
    %15 = vector.load %arg9[%c0_10, %c0_11, %c0_12] : memref<18x18x128xf32, #tpu.memory_space<vmem>>, vector<18x18x128xf32>
    tpu.vector_store %arg9[%c0_10, %c0_11, %c0_12], %14 {strides = array<i32>} : memref<18x18x128xf32, #tpu.memory_space<vmem>>, vector<18x18x128xf32>,
    %16 = vector.shape_cast %13 : vector<256x128xf32> to vector<16x16x128xf32>
    %c1 = arith.constant 1 : index
    %c1_13 = arith.constant 1 : index
    %c0_14 = arith.constant 0 : index
    %17 = vector.load %arg9[%c1, %c1_13, %c0_14] : memref<18x18x128xf32, #tpu.memory_space<vmem>>, vector<16x16x128xf32>
    tpu.vector_store %arg9[%c1, %c1_13, %c0_14], %16 {strides = array<i32>} : memref<18x18x128xf32, #tpu.memory_space<vmem>>, vector<16x16x128xf32>,
    %c0_15 = arith.constant 0 : index
    %c0_16 = arith.constant 0 : index
    %c0_17 = arith.constant 0 : index
    %18 = vector.load %arg9[%c0_15, %c0_16, %c0_17] : memref<18x18x128xf32, #tpu.memory_space<vmem>>, vector<16x16x128xf32>
    %19 = vector.shape_cast %18 : vector<16x16x128xf32> to vector<256x128xf32>
    %20 = arith.truncf %19 : vector<256x128xf32> to vector<256x128xbf16>
    %c0_18 = arith.constant 0 : index
    %c1_19 = arith.constant 1 : index
    %c0_20 = arith.constant 0 : index
    %21 = vector.load %arg9[%c0_18, %c1_19, %c0_20] : memref<18x18x128xf32, #tpu.memory_space<vmem>>, vector<16x16x128xf32>
    %22 = vector.shape_cast %21 : vector<16x16x128xf32> to vector<256x128xf32>
    %23 = arith.truncf %22 : vector<256x128xf32> to vector<256x128xbf16>
    %c0_21 = arith.constant 0 : index
    %c2 = arith.constant 2 : index
    %c0_22 = arith.constant 0 : index
    %24 = vector.load %arg9[%c0_21, %c2, %c0_22] : memref<18x18x128xf32, #tpu.memory_space<vmem>>, vector<16x16x128xf32>
    %25 = vector.shape_cast %24 : vector<16x16x128xf32> to vector<256x128xf32>
    %26 = arith.truncf %25 : vector<256x128xf32> to vector<256x128xbf16>
    %c1_23 = arith.constant 1 : index
    %c0_24 = arith.constant 0 : index
    %c0_25 = arith.constant 0 : index
    %27 = vector.load %arg9[%c1_23, %c0_24, %c0_25] : memref<18x18x128xf32, #tpu.memory_space<vmem>>, vector<16x16x128xf32>
    %28 = vector.shape_cast %27 : vector<16x16x128xf32> to vector<256x128xf32>
    %29 = arith.truncf %28 : vector<256x128xf32> to vector<256x128xbf16>
    %c1_26 = arith.constant 1 : index
    %c1_27 = arith.constant 1 : index
    %c0_28 = arith.constant 0 : index
    %30 = vector.load %arg9[%c1_26, %c1_27, %c0_28] : memref<18x18x128xf32, #tpu.memory_space<vmem>>, vector<16x16x128xf32>
    %31 = vector.shape_cast %30 : vector<16x16x128xf32> to vector<256x128xf32>
    %32 = arith.truncf %31 : vector<256x128xf32> to vector<256x128xbf16>
    %c1_29 = arith.constant 1 : index
    %c2_30 = arith.constant 2 : index
    %c0_31 = arith.constant 0 : index
    %33 = vector.load %arg9[%c1_29, %c2_30, %c0_31] : memref<18x18x128xf32, #tpu.memory_space<vmem>>, vector<16x16x128xf32>
    %34 = vector.shape_cast %33 : vector<16x16x128xf32> to vector<256x128xf32>
    %35 = arith.truncf %34 : vector<256x128xf32> to vector<256x128xbf16>
    %c2_32 = arith.constant 2 : index
    %c0_33 = arith.constant 0 : index
    %c0_34 = arith.constant 0 : index
    %36 = vector.load %arg9[%c2_32, %c0_33, %c0_34] : memref<18x18x128xf32, #tpu.memory_space<vmem>>, vector<16x16x128xf32>
    %37 = vector.shape_cast %36 : vector<16x16x128xf32> to vector<256x128xf32>
    %38 = arith.truncf %37 : vector<256x128xf32> to vector<256x128xbf16>
    %c2_35 = arith.constant 2 : index
    %c1_36 = arith.constant 1 : index
    %c0_37 = arith.constant 0 : index
    %39 = vector.load %arg9[%c2_35, %c1_36, %c0_37] : memref<18x18x128xf32, #tpu.memory_space<vmem>>, vector<16x16x128xf32>
    %40 = vector.shape_cast %39 : vector<16x16x128xf32> to vector<256x128xf32>
    %41 = arith.truncf %40 : vector<256x128xf32> to vector<256x128xbf16>
    %c2_38 = arith.constant 2 : index
    %c2_39 = arith.constant 2 : index
    %c0_40 = arith.constant 0 : index
    %42 = vector.load %arg9[%c2_38, %c2_39, %c0_40] : memref<18x18x128xf32, #tpu.memory_space<vmem>>, vector<16x16x128xf32>
    %43 = vector.shape_cast %42 : vector<16x16x128xf32> to vector<256x128xf32>
    %44 = arith.truncf %43 : vector<256x128xf32> to vector<256x128xbf16>
    %45 = tpu.concatenate %20, %23, %26, %29, %32, %35, %38, %41, %44 in 1 : vector<256x128xbf16>, vector<256x128xbf16>, vector<256x128xbf16>, vector<256x128xbf16>, vector<256x128xbf16>, vector<256x128xbf16>, vector<256x128xbf16>, vector<256x128xbf16>, vector<256x128xbf16> -> vector<256x1152xbf16>
    %c0_41 = arith.constant 0 : index
    %c0_42 = arith.constant 0 : index
    %46 = vector.load %arg5[%c0_41, %c0_42] : memref<1152x128xbf16, #tpu.memory_space<vmem>>, vector<1152x128xbf16>
    %cst_43 = arith.constant dense<0.000000e+00> : vector<256x128xf32>
    %47 = tpu.matmul %45, %46, %cst_43 {dimension_numbers = #tpu.dot_dimension_numbers<[1], [0], [0], [1], [0, 0, 1, 1], [], []>} : vector<256x1152xbf16>, vector<1152x128xbf16>, vector<256x128xf32> -> vector<256x128xf32>
    %c0_44 = arith.constant 0 : index
    %c0_45 = arith.constant 0 : index
    %48 = vector.load %arg6[%c0_44, %c0_45] : memref<1x128xf32, #tpu.memory_space<vmem>>, vector<1x128xf32>
    %49 = vector.broadcast %48 : vector<1x128xf32> to vector<256x128xf32>
    %50 = arith.mulf %47, %49 : vector<256x128xf32>
    %c0_46 = arith.constant 0 : index
    %c0_47 = arith.constant 0 : index
    %51 = vector.load %arg7[%c0_46, %c0_47] : memref<1x128xf32, #tpu.memory_space<vmem>>, vector<1x128xf32>
    %52 = vector.broadcast %51 : vector<1x128xf32> to vector<256x128xf32>
    %53 = arith.addf %50, %52 : vector<256x128xf32>
    %cst_48 = arith.constant 0.000000e+00 : f32
    %54 = vector.broadcast %cst_48 : f32 to vector<256x128xf32>
    %55 = arith.maximumf %53, %54 : vector<256x128xf32>
    %56 = vector.shape_cast %55 : vector<256x128xf32> to vector<1x256x128xf32>
    %c0_49 = arith.constant 0 : index
    %c0_50 = arith.constant 0 : index
    %c0_51 = arith.constant 0 : index
    %57 = vector.load %arg8[%c0_49, %c0_50, %c0_51] : memref<1x256x128xf32, #tpu.memory_space<vmem>>, vector<1x256x128xf32>
    tpu.vector_store %arg8[%c0_49, %c0_50, %c0_51], %56 {strides = array<i32>} : memref<1x256x128xf32, #tpu.memory_space<vmem>>, vector<1x256x128xf32>,
    return
  }
  func.func @transform_0(%arg0: i32) -> (i32, i32, i32) {
    %c0_i32 = arith.constant 0 : i32
    %c0_i32_0 = arith.constant 0 : i32
    %c0_i32_1 = arith.constant 0 : i32
    return %arg0, %c0_i32, %c0_i32_0 : i32, i32, i32
  }
  func.func @transform_1(%arg0: i32) -> (i32, i32) {
    %c0_i32 = arith.constant 0 : i32
    %c0_i32_0 = arith.constant 0 : i32
    %c0_i32_1 = arith.constant 0 : i32
    return %c0_i32, %c0_i32_0 : i32, i32
  }
  func.func @transform_2(%arg0: i32) -> (i32, i32) {
    %c0_i32 = arith.constant 0 : i32
    %c0_i32_0 = arith.constant 0 : i32
    %c0_i32_1 = arith.constant 0 : i32
    return %c0_i32, %c0_i32_0 : i32, i32
  }
  func.func @transform_3(%arg0: i32) -> (i32, i32) {
    %c0_i32 = arith.constant 0 : i32
    %c0_i32_0 = arith.constant 0 : i32
    %c0_i32_1 = arith.constant 0 : i32
    return %c0_i32, %c0_i32_0 : i32, i32
  }
  func.func @transform_4(%arg0: i32) -> (i32, i32) {
    %c0_i32 = arith.constant 0 : i32
    %c0_i32_0 = arith.constant 0 : i32
    %c0_i32_1 = arith.constant 0 : i32
    return %c0_i32, %c0_i32_0 : i32, i32
  }
  func.func @transform_5(%arg0: i32) -> (i32, i32) {
    %c0_i32 = arith.constant 0 : i32
    %c0_i32_0 = arith.constant 0 : i32
    %c0_i32_1 = arith.constant 0 : i32
    return %c0_i32, %c0_i32_0 : i32, i32
  }
  func.func @transform_6(%arg0: i32) -> (i32, i32) {
    %c0_i32 = arith.constant 0 : i32
    %c0_i32_0 = arith.constant 0 : i32
    %c0_i32_1 = arith.constant 0 : i32
    return %c0_i32, %c0_i32_0 : i32, i32
  }
  func.func @transform_7(%arg0: i32) -> (i32, i32, i32) {
    %c0_i32 = arith.constant 0 : i32
    %c0_i32_0 = arith.constant 0 : i32
    %c0_i32_1 = arith.constant 0 : i32
    return %arg0, %c0_i32, %c0_i32_0 : i32, i32, i32
  }
}

</mosaic_0001>

<bundles_post_ra>
// kernel: generator_forward.1
= control target key start
LH: loop header
LB: loop body
LE: loop exit
PB: predicated region body
PF: predicated region fallthrough
CT: control target
= control target key end

     0   :  { %12 = vsyncpa [#allocation4], 0  ;;  %s4922_s0 = inlined_call_operand.vmem [shape: bf16[2,256,54], index: 0, kind: input, shape index: {}]   ;;  %s4923_s1 = inlined_call_operand.vmem [shape: bf16[54,128], index: 1, kind: input, shape index: {}]   ;;  %s4924_s2 = inlined_call_operand.vmem [shape: f32[1,128], index: 2, kind: input, shape index: {}]   ;;  %s4925_s3 = inlined_call_operand.vmem [shape: f32[1,128], index: 3, kind: input, shape index: {}]   ;;  %s4926_s4 = inlined_call_operand.vmem [shape: bf16[1152,128], index: 4, kind: input, shape index: {}]   ;;  %s4927_s5 = inlined_call_operand.vmem [shape: f32[1,128], index: 5, kind: input, shape index: {}]   ;;  %s4928_s6 = inlined_call_operand.vmem [shape: f32[1,128], index: 6, kind: input, shape index: {}]   ;;  %s4929_s7 = inlined_call_operand.hbm [shape: f32[2,256,128], index: 7, kind: output, shape index: {}]  }
   0x1   :  { %14 = vsyncpa [#allocation4 + $0x1], 0  ;;  %s3874_s24 = smov 0   ;;  %s3876_s25 = smov 0  }
   0x2   :  { %s3878_s26 = smov 0   ;;  %s3880_s27 = smov 0  }
   0x3 LB: > { %s3895_s28 = sadd.s32 4294967295, %s3827_s27   ;;  %s2909_s29 = sadd.s32 4294967294, %s3827_s27   ;;  %s3827_s27 = sphi %s3880_s27, %s4963_s27   ;;  %s3823_s26 = sphi %s3878_s26, %s4962_s26   ;;  %s3819_s25 = sphi %s3876_s25, %s4961_s25   ;;  %s3815_s24 = sphi %s3874_s24, %s4960_s24  }
   0x4   : > { %s3899_s30 = sadd.s32 1, %s3827_s27   ;;  %s179_s8 = sadd.s32 1, %s3823_s26 }
   0x5   : > { %s176_s9 = ssub.s32 %s3827_s27, %s3899_s30  ;;  %p189_p0 = scmp.ne.s32.totalorder %s3823_s26, %s3819_s25 }
   0x6   : > { %p177_p1 = scmp.eq.s32.totalorder %s176_s9, 0  ;;  %p190_p2 = scmp.eq.s32.totalorder %s3895_s28, 1 }
   0x7   : > { %p195_p3 = scmp.ne.s32.totalorder %s3819_s25, %s3815_s24  ;;  %p196_p4 = scmp.eq.s32.totalorder %s2909_s29, 1 }
   0x8   : > { %s3910_s10 = scalar_select %p177_p1, %s3823_s26, %s179_s8  }
   0x9   : > { %p3912_p5 = por %p190_p2, %p189_p0  ;;  %p3916_p6 = por %p196_p4, %p195_p3 }
   0xa   : > { %p2912_p7 = scmp.ge.s32.totalorder %s3827_s27, 1  ;;  %p240_p8 = scmp.lt.s32.totalorder %s3827_s27, 3 }
   0xc   : > { %p241_p9 = pnand %p2912_p7, %p240_p8 }
   0xe   : > { %244 = sbr.rel (%p241_p9) target bundleno = 772 (0x304), region = 48 }
  0x13   : > { %v3674_v0 = vld [vmem:[%s4923_s1 + $0x18] ss:$0 sps:$4 sm:$0x77]   ;;  %vm467_vm0 = vcmask 1042432   ;;  %v3675_v1 = vld [vmem:[%s4923_s1 + $0x10] sm:$0xff]   ;;  %p272_p10 = scmp.lt.s32.totalorder %s3895_s28, 1 }
  0x14   : > { %3631 = vmatprep.subr.msk.bf16.mxu0 %vm467_vm0, %v3674_v0  ;;  %v469_v2 = vsel %vm467_vm0, %v3674_v0, 0  ;;  %v3676_v3 = vld [vmem:[%s4923_s1 + $0x8] sm:$0xff]   ;;  %v3694_v4 = vld [vmem:[%s4926_s4 + $0x78] sm:$0xff]   ;;  %vm418_vm1 = vcmask 441344   ;;  %v3696_v6 = vld [vmem:[%s4926_s4 + $0x70] sm:$0xff]   ;;  %v3829_v37 = vmov 0.0  }
  0x15   : > { %3528 = vmatpush3.bf16.msra.mxu0 %v469_v2  ;;  %s273_s19 = scalar_select %p272_p10, %s3895_s28, 1  ;;  %v3695_v5 = vld [vmem:[%s4926_s4 + $0x38] sm:$0xff]   ;;  %3055 = vmatprep.subr.bf16.mxu1 %v3694_v4  ;;  %v3677_v8 = vld [vmem:[%s4923_s1] sm:$0xff]   ;;  %v3697_v13 = vld [vmem:[%s4926_s4 + $0x30] sm:$0xff]   ;;  %796 = vst [vmem:[#allocation2 + $0x30] sm:$0xff] %v3829_v37  ;;  %v3830_v51 = vmov 0.0|0.0  }
  0x16   : > { %3529 = vmatprep.subr.bf16.mxu0 %v3675_v1  ;;  %3056 = vmatpush3.bf16.msra.mxu1 %v3695_v5  ;;  %v3698_v14 = vld [vmem:[%s4926_s4 + $0x68] sm:$0xff]   ;;  %v3700_v16 = vld [vmem:[%s4926_s4 + $0x60] sm:$0xff]   ;;  %v3702_v19 = vld [vmem:[%s4926_s4 + $0xf8] sm:$0xff]   ;;  %797 = vst [vmem:[#allocation2 + $0x38] sm:$0xff] %v3829_v37  ;;  %s269_s21 = sand.u32 1, %s3819_s25   ;;  %s3034_s15 = sshll.u32 %s3895_s28, 12 }
  0x17   : > { %s3033_s22 = sshll.u32 %s273_s19, 7  ;;  %3057 = vmatprep.subr.bf16.mxu1 %v3696_v6  ;;  %v3699_v15 = vld [vmem:[%s4926_s4 + $0x28] sm:$0xff]   ;;  %v3701_v17 = vld [vmem:[%s4926_s4 + $0x20] sm:$0xff]   ;;  %v3703_v21 = vld [vmem:[%s4926_s4 + $0xb8] sm:$0xff]   ;;  %798 = vst [vmem:[#allocation2 + $0x40] sm:$0x3] %v3829_v37  ;;  %s4874_s18 = scalar_lea.hbm %s4929_s7, %s3034_s15 }
  0x18   : > { %s3942_s13 = scalar_lea.vmem %s4922_s0, %s3033_s22  ;;  %v3704_v22 = vld [vmem:[%s4926_s4 + $0x58] sm:$0xff]   ;;  %v3706_v33 = vld [vmem:[%s4926_s4 + $0xf0] sm:$0xff]   ;;  %790 = vst [vmem:[#allocation2] sm:$0xff] %v3829_v37  ;;  %791 = vst [vmem:[#allocation2 + $0x8] sm:$0xff] %v3829_v37  ;;  %s2913_s9 = sshll.u32 %s269_s21, 8 }
  0x19   : > { %3530 = vmatpush3.bf16.msra.mxu0 %v3675_v1  ;;  %v3678_v7 = vld [vmem:[%s3942_s13] sm:$0xff]   ;;  %v3679_v9 = vld [vmem:[%s3942_s13 + $0x8] sm:$0xff]   ;;  %v3680_v10 = vld [vmem:[%s3942_s13 + $0x10] sm:$0xff]   ;;  %792 = vst [vmem:[#allocation2 + $0x10] sm:$0x3] %v3829_v37  ;;  %s4718_s14 = scalar_lea.vmem [#allocation3], %s2913_s9 }
  0x1a   : > { %3531 = vmatprep.subr.bf16.mxu0 %v3676_v3  ;;  %3535 = vmatprep.mubr.msk.bf16.mxu0 %vm418_vm1, %v3678_v7  ;;  %v3681_v11 = vld [vmem:[%s3942_s13 + $0x18] sm:$0xff]   ;;  %v3682_v12 = vld [vmem:[%s3942_s13 + $0x20] sm:$0xff]   ;;  %v3683_v18 = vld [vmem:[%s3942_s13 + $0x28] sm:$0xff]   ;;  %793 = vst [vmem:[#allocation2 + $0x18] sm:$0xff] %v3829_v37  ;;  %s2847_s16 = sshll.u32 %s4718_s14, 4  ;;  %s4882_s28 = scalar_lea.sflag [#allocation4], %s269_s21  ;;  %s4876_s16 = int_to_ptr.vmem [resolvable:$true] %s2847_s16 }
  0x1b   : > { %3058 = vmatpush3.bf16.msra.mxu1 %v3697_v13  ;;  %v3684_v20 = vld [vmem:[%s3942_s13 + $0x30] sm:$0xff]   ;;  %v3705_v23 = vld [vmem:[%s4926_s4 + $0x18] sm:$0xff]   ;;  %v3686_v25 = vld [vmem:[%s3942_s13 + $0x40] sm:$0xff]   ;;  %794 = vst [vmem:[#allocation2 + $0x20] sm:$0xff] %v3829_v37  ;;  %s3767_s19 = scalar_lea.vmem %s4876_s16, 4096  ;;  %s3831_s20 = smov [#allocation3]  }
  0x1c   : > { %3059 = vmatprep.subr.bf16.mxu1 %v3698_v14  ;;  %v3685_v24 = vld [vmem:[%s3942_s13 + $0x38] sm:$0xff]   ;;  %v3687_v26 = vld [vmem:[%s3942_s13 + $0x48] sm:$0xff]   ;;  %v3688_v27 = vld [vmem:[%s3942_s13 + $0x50] sm:$0xff]   ;;  %795 = vst [vmem:[#allocation2 + $0x28] sm:$0x3] %v3829_v37  ;;  %p3768_p11 = scmp.ne.s32.totalorder %s4876_s16, %s3767_s19  ;;  %s3771_s22 = sshll.u32 %s3831_s20, 4  ;;  %s3772_s22 = int_to_ptr.vmem [resolvable:$false] %s3771_s22 }
  0x1d   : > { %3532 = vmatpush3.bf16.msra.mxu0 %v3676_v3  ;;  %v3689_v28 = vld [vmem:[%s3942_s13 + $0x58] sm:$0xff]   ;;  %v3690_v29 = vld [vmem:[%s3942_s13 + $0x60] sm:$0xff]   ;;  %v3691_v30 = vld [vmem:[%s3942_s13 + $0x68] sm:$0xff]   ;;  %799 = vst [vmem:[#allocation2 + $0x48] sm:$0xff] %v3829_v37  ;;  %s3773_s23 = scalar_lea.vmem %s3772_s22, 8192  ;;  %p3774_p0 = scmp.lt.s32.totalorder %s4876_s16, %s3772_s22 }
  0x1e   : > { %3533 = vmatprep.subr.bf16.mxu0 %v3677_v8  ;;  %v3692_v31 = vld [vmem:[%s3942_s13 + $0x70] sm:$0xff]   ;;  %v3693_v32 = vld [vmem:[%s3942_s13 + $0x78] sm:$0xff]   ;;  %800 = vst [vmem:[#allocation2 + $0x50] sm:$0xff] %v3829_v37  ;;  %801 = vst [vmem:[#allocation2 + $0x58] sm:$0x3] %v3829_v37  ;;  %p3769_p12 = pnand %p3768_p11, %p3912_p5  ;;  %p3775_p1 = scmp.lt.s32.totalorder %s3773_s23, %s3767_s19 }
  0x1f   : > { %3060 = vmatpush3.bf16.msra.mxu1 %v3699_v15  ;;  %v3707_v34 = vld [vmem:[%s4926_s4 + $0xb0] sm:$0xff]   ;;  %802 = vst [vmem:[#allocation2 + $0x60] sm:$0xff] %v3829_v37  ;;  %803 = vst [vmem:[#allocation2 + $0x68] sm:$0xff] %v3829_v37  ;;  %v3710_v38 = vld [vmem:[%s4926_s4 + $0xe8] sm:$0xff]  }
  0x20   : > { %3061 = vmatprep.subr.bf16.mxu1 %v3700_v16  ;;  %v3708_v35 = vld [vmem:[%s4926_s4 + $0x50] sm:$0xff]   ;;  %804 = vst [vmem:[#allocation2 + $0x70] sm:$0x3] %v3829_v37  ;;  %805 = vst [vmem:[#allocation2 + $0x78] sm:$0xff] %v3829_v37  ;;  %v3711_v39 = vld [vmem:[%s4926_s4 + $0xa8] sm:$0xff]   ;;  %p3770_p13 = pneg %p3769_p12  ;;  %p3776_p2 = por %p3775_p1, %p3774_p0 }
  0x21   : > { %3534 = vmatpush3.bf16.msra.mxu0 %v3677_v8  ;;  %v3709_v36 = vld [vmem:[%s4926_s4 + $0x10] sm:$0xff]   ;;  %806 = vst [vmem:[#allocation2 + $0x80] sm:$0xff] %v3829_v37  ;;  %807 = vst [vmem:[#allocation2 + $0x88] sm:$0x3] %v3829_v37  ;;  %v3712_v40 = vld [vmem:[%s4926_s4 + $0x48] sm:$0xff]  }
  0x22   : > { %3167 = vmatprep.subr.bf16.mxu0 %v3702_v19  ;;  %808 = vst [vmem:[#allocation2 + $0x90] sm:$0xff] %v3829_v37  ;;  %809 = vst [vmem:[#allocation2 + $0x98] sm:$0xff] %v3829_v37  ;;  %v3713_v41 = vld [vmem:[%s4926_s4 + $0x8] sm:$0xff]   ;;  %v3714_v42 = vld [vmem:[%s4926_s4 + $0xe0] sm:$0xff]   ;;  %p3777_p3 = pnand %p3776_p2, %p3770_p13 }
  0x23   : > { %3062 = vmatpush3.bf16.msra.mxu1 %v3701_v17  ;;  %810 = vst [vmem:[#allocation2 + $0xa0] sm:$0x3] %v3829_v37  ;;  %811 = vst [vmem:[#allocation2 + $0xa8] sm:$0xff] %v3829_v37  ;;  %v3715_v43 = vld [vmem:[%s4926_s4 + $0xa0] sm:$0xff]   ;;  %v926_v47 = vld [vmem:[#allocation2 + $0x9] sm:$0xff] }
  0x24   : > { %3536 = vmatmul.mubr.msk.bf16.vlgmr.msra.gmra.mxu0 %vm418_vm1, %v3679_v9  ;;  %3063 = vmatprep.subr.bf16.mxu1 %v3704_v22  ;;  %812 = vst [vmem:[#allocation2 + $0xb0] sm:$0xff] %v3829_v37  ;;  %813 = vst [vmem:[#allocation2 + $0xb8] sm:$0x3] %v3829_v37  ;;  %v3716_v44 = vld [vmem:[%s4926_s4 + $0x40] sm:$0xff]   ;;  %v3718_v48 = vld [vmem:[%s4926_s4 + $0xd8] sm:$0xff]  }
  0x25   : > { %3539 = vmatprep.mubr.msk.bf16.mxu0 %vm418_vm1, %v3680_v10  ;;  %3168 = vmatpush3.bf16.msra.mxu0 %v3703_v21  ;;  %814 = vst [vmem:[#allocation2 + $0xc0] sm:$0xff] %v3829_v37  ;;  %815 = vst [vmem:[#allocation2 + $0xc8] sm:$0xff] %v3829_v37  ;;  %v3717_v45 = vld [vmem:[%s4926_s4] sm:$0xff]   ;;  %v3719_v50 = vld [vmem:[%s4926_s4 + $0x98] sm:$0xff]  }
  0x26   : > { %3169 = vmatprep.subr.bf16.mxu0 %v3706_v33  ;;  %816 = vst [vmem:[#allocation2 + $0xd0] sm:$0x3] %v3829_v37  ;;  %817 = vst [vmem:[#allocation2 + $0xd8] sm:$0xff] %v3829_v37  ;;  %v925_v46 = vld [vmem:[#allocation2 + $0x1] sm:$0xff]  ;;  %v3720_v52 = vld [vmem:[%s4926_s4 + $0xd0] sm:$0xff]  }
  0x27   : > { %3064 = vmatpush3.bf16.msra.mxu1 %v3705_v23  ;;  %818 = vst [vmem:[#allocation2 + $0xe0] sm:$0xff] %v3829_v37  ;;  %819 = vst [vmem:[#allocation2 + $0xe8] sm:$0x3] %v3829_v37  ;;  %v957_v49 = vpack.c.bf16 %v926_v47, %v925_v46  ;;  %v3721_v53 = vld [vmem:[%s4926_s4 + $0x90] sm:$0xff]   ;;  %v3723_v54 = vld [vmem:[%s4926_s4 + $0xc8] sm:$0xff]  }
  0x28   : > { %3065 = vmatprep.subr.bf16.mxu1 %v3708_v35  ;;  %820 = vst [vmem:[#allocation2 + $0xf0] sm:$0xff] %v3829_v37  ;;  %821 = vst [vmem:[#allocation2 + $0xf8] sm:$0xff] %v3829_v37  ;;  %v3725_v55 = vld [vmem:[%s4926_s4 + $0x88] sm:$0xff]   ;;  %v3726_v56 = vld [vmem:[%s4926_s4 + $0xc0] sm:$0xff]  }
  0x29   : > { %3170 = vmatpush3.bf16.msra.mxu0 %v3707_v34  ;;  %822 = vst [vmem:[#allocation2 + $0x100] sm:$0x3] %v3829_v37  ;;  %823 = vst [vmem:[#allocation2 + $0x108] sm:$0xff] %v3829_v37  ;;  %1918 = vmatprep.mubr.bf16.mxu1 %v957_v49  ;;  %v3727_v57 = vld [vmem:[%s4926_s4 + $0x80] sm:$0xff]   ;;  %v3722_v58 = vld [vmem:[%s4926_s4 + $0x178] sm:$0xff]  }
  0x2a   : > { %824 = vst [vmem:[#allocation2 + $0x110] sm:$0xff] %v3829_v37  ;;  %825 = vst [vmem:[#allocation2 + $0x118] sm:$0x3] %v3829_v37  ;;  %3171 = vmatprep.subr.bf16.mxu0 %v3710_v38  ;;  %v3724_v59 = vld [vmem:[%s4926_s4 + $0x138] sm:$0xff]   ;;  %v3728_v60 = vld [vmem:[%s4926_s4 + $0x170] sm:$0xff]  }
  0x2b   : > { %3066 = vmatpush3.bf16.msra.mxu1 %v3709_v36  ;;  %826 = vst [vmem:[#allocation2 + $0x120] sm:$0xff] %v3829_v37  ;;  %827 = vst [vmem:[#allocation2 + $0x128] sm:$0xff] %v3829_v37  ;;  %v3729_v61 = vld [vmem:[%s4926_s4 + $0x130] sm:$0xff]   ;;  %v3730_v62 = vld [vmem:[%s4926_s4 + $0x168] sm:$0xff]  }
  0x2c   : > { %3540 = vmatmul.mubr.msk.bf16.gmra.mxu0 %vm418_vm1, %v3681_v11  ;;  %828 = vst [vmem:[#allocation2 + $0x130] sm:$0x3] %v3829_v37  ;;  %829 = vst [vmem:[#allocation2 + $0x138] sm:$0xff] %v3829_v37  ;;  %3067 = vmatprep.subr.bf16.mxu1 %v3712_v40  ;;  %v3731_v63 = vld [vmem:[%s4926_s4 + $0x128] sm:$0xff]   ;;  %v3732_v0 = vld [vmem:[%s4926_s4 + $0x160] sm:$0xff]  }
  0x2d   : > { %3543 = vmatprep.mubr.msk.bf16.mxu0 %vm418_vm1, %v3682_v12  ;;  %830 = vst [vmem:[#allocation2 + $0x140] sm:$0xff] %v3829_v37  ;;  %831 = vst [vmem:[#allocation2 + $0x148] sm:$0x3] %v3829_v37  ;;  %3172 = vmatpush3.bf16.msra.mxu0 %v3711_v39  ;;  %v3733_v1 = vld [vmem:[%s4926_s4 + $0x1f8] sm:$0xff]   ;;  %v3734_v2 = vld [vmem:[%s4926_s4 + $0x120] sm:$0xff]  }
  0x2e   : > { %832 = vst [vmem:[#allocation2 + $0x150] sm:$0xff] %v3829_v37  ;;  %833 = vst [vmem:[#allocation2 + $0x158] sm:$0xff] %v3829_v37  ;;  %3173 = vmatprep.subr.bf16.mxu0 %v3714_v42  ;;  %v3736_v3 = vld [vmem:[%s4926_s4 + $0x158] sm:$0xff]   ;;  %v3740_v5 = vld [vmem:[%s4926_s4 + $0x150] sm:$0xff]  }
  0x2f   : > { %834 = vst [vmem:[#allocation2 + $0x160] sm:$0x3] %v3829_v37  ;;  %835 = vst [vmem:[#allocation2 + $0x168] sm:$0xff] %v3829_v37  ;;  %3068 = vmatpush3.bf16.msra.mxu1 %v3713_v41  ;;  %v3738_v4 = vld [vmem:[%s4926_s4 + $0x118] sm:$0xff]   ;;  %v3742_v6 = vld [vmem:[%s4926_s4 + $0x110] sm:$0xff]  }
  0x30   : > { %836 = vst [vmem:[#allocation2 + $0x170] sm:$0xff] %v3829_v37  ;;  %837 = vst [vmem:[#allocation2 + $0x178] sm:$0x3] %v3829_v37  ;;  %3069 = vmatprep.subr.bf16.mxu1 %v3716_v44  ;;  %v3744_v7 = vld [vmem:[%s4926_s4 + $0x148] sm:$0xff]   ;;  %v3748_v9 = vld [vmem:[%s4926_s4 + $0x140] sm:$0xff]  }
  0x31   : > { %838 = vst [vmem:[#allocation2 + $0x180] sm:$0xff] %v3829_v37  ;;  %839 = vst [vmem:[#allocation2 + $0x188] sm:$0xff] %v3829_v37  ;;  %3174 = vmatpush3.bf16.msra.mxu0 %v3715_v43  ;;  %v3746_v8 = vld [vmem:[%s4926_s4 + $0x108] sm:$0xff]   ;;  %v4120_v10 = vld [vmem:[%s4924_s2] ss:$0 sm:$0xff] }
  0x32   : > { %840 = vst [vmem:[#allocation2 + $0x190] sm:$0x3] %v3829_v37  ;;  %841 = vst [vmem:[#allocation2 + $0x198] sm:$0xff] %v3829_v37  ;;  %3175 = vmatprep.subr.bf16.mxu0 %v3718_v48  ;;  %v4126_v13 = vld [vmem:[%s4925_s3] ss:$0 sm:$0xff]  ;;  %v4148_v39 = vld [vmem:[%s4926_s4 + $0x238] sm:$0xff]  }
  0x33   : > { %842 = vst [vmem:[#allocation2 + $0x1a0] sm:$0xff] %v3829_v37  ;;  %843 = vst [vmem:[#allocation2 + $0x1a8] sm:$0x3] %v3829_v37  ;;  %3070 = vmatpush3.bf16.msra.mxu1 %v3717_v45  ;;  %v3750_v17 = vld [vmem:[%s4926_s4 + $0x100] sm:$0xff]  }
  0x34   : > { %3544 = vmatmul.mubr.msk.bf16.gmra.mxu0 %vm418_vm1, %v3683_v18  ;;  %3279 = vmatprep.subr.bf16.mxu1 %v3722_v58 }
  0x35   : > { %3547 = vmatprep.mubr.msk.bf16.mxu0 %vm418_vm1, %v3684_v20  ;;  %3176 = vmatpush3.bf16.msra.mxu0 %v3719_v50 }
  0x36   : > { %1919 = vmatmul.mubr.bf16.vlgmr.msra.gmra.mxu1 %v3830_v51  ;;  %3177 = vmatprep.subr.bf16.mxu0 %v3720_v52 }
  0x37   : > { %3280 = vmatpush3.bf16.msra.mxu1 %v3724_v59 }
  0x38   : > { %3281 = vmatprep.subr.bf16.mxu1 %v3728_v60  ;;  %v973_v60 = vld [vmem:[#allocation2 + $0x2] sm:$0xff] }
  0x39   : > { %3178 = vmatpush3.bf16.msra.mxu0 %v3721_v53 }
  0x3a   : > { %3179 = vmatprep.subr.bf16.mxu0 %v3723_v54 }
  0x3b   : > { %3282 = vmatpush3.bf16.msra.mxu1 %v3729_v61  ;;  %v974_v61 = vld [vmem:[#allocation2 + $0xa] sm:$0xff] }
  0x3c   : > { %3548 = vmatmul.mubr.msk.bf16.gmra.mxu0 %vm418_vm1, %v3685_v24  ;;  %3283 = vmatprep.subr.bf16.mxu1 %v3730_v62 }
  0x3d   : > { %3551 = vmatprep.mubr.msk.bf16.mxu0 %vm418_vm1, %v3686_v25  ;;  %3180 = vmatpush3.bf16.msra.mxu0 %v3725_v55 }
  0x3e   : > { %3181 = vmatprep.subr.bf16.mxu0 %v3726_v56 }
  0x3f   : > { %3284 = vmatpush3.bf16.msra.mxu1 %v3731_v63 }
  0x40   : > { %3285 = vmatprep.subr.bf16.mxu1 %v3732_v0 }
  0x41   : > { %3182 = vmatpush3.bf16.msra.mxu0 %v3727_v57 }
  0x42   : > { %3391 = vmatprep.subr.bf16.mxu0 %v3733_v1 }
  0x43   : > { %3286 = vmatpush3.bf16.msra.mxu1 %v3734_v2 }
  0x44   : > { %3552 = vmatmul.mubr.msk.bf16.gmra.mxu0 %vm418_vm1, %v3687_v26  ;;  %3287 = vmatprep.subr.bf16.mxu1 %v3736_v3 }
  0x45   : > { %3555 = vmatprep.mubr.msk.bf16.mxu0 %vm418_vm1, %v3688_v27 }
  0x47   : > { %3288 = vmatpush3.bf16.msra.mxu1 %v3738_v4 }
  0x48   : > { %3289 = vmatprep.subr.bf16.mxu1 %v3740_v5 }
  0x4b   : > { %3290 = vmatpush3.bf16.msra.mxu1 %v3742_v6 }
  0x4c   : > { %3556 = vmatmul.mubr.msk.bf16.gmra.mxu0 %vm418_vm1, %v3689_v28  ;;  %3291 = vmatprep.subr.bf16.mxu1 %v3744_v7 }
  0x4d   : > { %3559 = vmatprep.mubr.msk.bf16.mxu0 %vm418_vm1, %v3690_v29 }
  0x4f   : > { %3292 = vmatpush3.bf16.msra.mxu1 %v3746_v8 }
  0x50   : > { %3293 = vmatprep.subr.bf16.mxu1 %v3748_v9  ;;  %v1005_v9 = vpack.c.bf16 %v974_v61, %v973_v60 }
  0x53   : > { %3294 = vmatpush3.bf16.msra.mxu1 %v3750_v17 }
  0x54   : > { %3560 = vmatmul.mubr.msk.bf16.gmra.mxu0 %vm418_vm1, %v3691_v30  ;;  %3615 = vmatprep.subr.bf16.mxu1 %v4148_v39 }
  0x55   : > { %3563 = vmatprep.mubr.msk.bf16.mxu0 %vm418_vm1, %v3692_v31 }
  0x5c   : > { %3564 = vmatmul.mubr.msk.bf16.gmra.mxu0 %vm418_vm1, %v3693_v32 }
  0xe4   : > { %v3537_v11 = vpop.f32.mrf.mxu0 }
  0xe5   : > { %v641_v12 = vmul.f32 %v3537_v11, %v4120_v10 }
  0xe6   : > { %v505_v14 = vpop.f32.mrf.mxu0 }
  0xe7   : > { %v639_v15 = vmul.f32 %v4120_v10, %v505_v14  ;;  %v680_v18 = vadd.f32 %v4126_v13, %v641_v12 }
  0xe8   : > { %v3538_v16 = vpop.f32.mrf.mxu0 }
  0xe9   : > { %v642_v19 = vmul.f32 %v3538_v16, %v4120_v10  ;;  %v678_v21 = vadd.f32 %v4126_v13, %v639_v15  ;;  %v712_v25 = vmax.f32 %v680_v18, 0.0  ;;  %v3735_v18 = vld [vmem:[%s4926_s4 + $0x1b8] sm:$0xff]  }
  0xea   : > { %v508_v20 = vpop.f32.mrf.mxu0 }
  0xeb   : > { %v681_v22 = vadd.f32 %v4126_v13, %v642_v19  ;;  %v640_v23 = vmul.f32 %v4120_v10, %v508_v20  ;;  %v710_v30 = vmax.f32 %v678_v21, 0.0 }
  0xec   : > { %v3541_v24 = vpop.f32.mrf.mxu0 }
  0xed   : > { %v713_v26 = vmax.f32 %v681_v22, 0.0  ;;  %v679_v27 = vadd.f32 %v4126_v13, %v640_v23  ;;  %v645_v28 = vmul.f32 %v3541_v24, %v4120_v10  ;;  %v3737_v23 = vld [vmem:[%s4926_s4 + $0x1f0] sm:$0xff]  }
  0xee   : > { %v521_v29 = vpop.f32.mrf.mxu0 }
  0xef   : > { %v4139_v31 = vpack.c.bf16 %v713_v26, %v712_v25  ;;  %v711_v32 = vmax.f32 %v679_v27, 0.0  ;;  %v643_v33 = vmul.f32 %v4120_v10, %v521_v29  ;;  %v684_v34 = vadd.f32 %v4126_v13, %v645_v28 }
  0xf0   : > { %v3542_v35 = vpop.f32.mrf.mxu0 }
  0xf1   : > { %v760_v36 = vunpack.c.l.bf16 %v4139_v31  ;;  %v761_v37 = vunpack.c.h.bf16 %v4139_v31  ;;  %v742_v38 = vpack.c.bf16 %v711_v32, %v710_v30  ;;  %v682_v40 = vadd.f32 %v4126_v13, %v643_v33  ;;  %v3739_v33 = vld [vmem:[%s4926_s4 + $0x1b0] sm:$0xff]  }
  0xf2   : > { %v646_v41 = vmul.f32 %v3542_v35, %v4120_v10  ;;  %v524_v42 = vpop.f32.mrf.mxu0  ;;  %v716_v46 = vmax.f32 %v684_v34, 0.0 }
  0xf3   : > { %847 = vst [vmem:[#allocation2 + $0x31] sm:$0xff] %v760_v36  ;;  %848 = vst [vmem:[#allocation2 + $0x39] sm:$0xff] %v761_v37  ;;  %v758_v43 = vunpack.c.l.bf16 %v742_v38  ;;  %v759_v44 = vunpack.c.h.bf16 %v742_v38  ;;  %v644_v45 = vmul.f32 %v4120_v10, %v524_v42  ;;  %v714_v49 = vmax.f32 %v682_v40, 0.0  ;;  %1926 = vmatprep.mubr.bf16.mxu1 %v742_v38  ;;  %v3741_v37 = vld [vmem:[%s4926_s4 + $0x1e8] sm:$0xff]  }
  0xf4   : > { %v685_v47 = vadd.f32 %v4126_v13, %v646_v41  ;;  %v3545_v48 = vpop.f32.mrf.mxu0 }
  0xf5   : > { %845 = vst [vmem:[#allocation2 + $0x19] sm:$0xff] %v758_v43  ;;  %846 = vst [vmem:[#allocation2 + $0x21] sm:$0xff] %v759_v44  ;;  %v683_v50 = vadd.f32 %v4126_v13, %v644_v45  ;;  %v649_v51 = vmul.f32 %v3545_v48, %v4120_v10 }
  0xf6   : > { %v717_v52 = vmax.f32 %v685_v47, 0.0  ;;  %v537_v53 = vpop.f32.mrf.mxu0 }
  0xf7   : > { %v715_v54 = vmax.f32 %v683_v50, 0.0  ;;  %v647_v55 = vmul.f32 %v4120_v10, %v537_v53  ;;  %v688_v57 = vadd.f32 %v4126_v13, %v649_v51 }
  0xf8   : > { %v4158_v56 = vpack.c.bf16 %v717_v52, %v716_v46  ;;  %v3546_v58 = vpop.f32.mrf.mxu0 }
  0xf9   : > { %v4161_v59 = vpack.c.bf16 %v715_v54, %v714_v49  ;;  %v650_v62 = vmul.f32 %v3546_v58, %v4120_v10  ;;  %v686_v1 = vadd.f32 %v4126_v13, %v647_v55  ;;  %v720_v6 = vmax.f32 %v688_v57, 0.0  ;;  %v3743_v54 = vld [vmem:[%s4926_s4 + $0x1a8] sm:$0xff]   ;;  %v3745_v58 = vld [vmem:[%s4926_s4 + $0x1e0] sm:$0xff]  }
  0xfa   : > { %v764_v63 = vunpack.c.l.bf16 %v4158_v56  ;;  %v765_v0 = vunpack.c.h.bf16 %v4158_v56  ;;  %v540_v2 = vpop.f32.mrf.mxu0  ;;  %v1023_v5 = vld [vmem:[#allocation2 + $0x30] sm:$0xff]  ;;  %v1024_v11 = vld [vmem:[#allocation2 + $0x38] sm:$0xff] }
  0xfb   : > { %v762_v3 = vunpack.c.l.bf16 %v4161_v59  ;;  %v763_v4 = vunpack.c.h.bf16 %v4161_v59  ;;  %v689_v12 = vadd.f32 %v4126_v13, %v650_v62  ;;  %v648_v14 = vmul.f32 %v4120_v10, %v540_v2 }
  0xfc   : > { %851 = vst [vmem:[#allocation2 + $0x61] sm:$0xff] %v764_v63  ;;  %852 = vst [vmem:[#allocation2 + $0x69] sm:$0xff] %v765_v0  ;;  %v1021_v7 = vld [vmem:[#allocation2 + $0x18] sm:$0xff]  ;;  %v1022_v8 = vld [vmem:[#allocation2 + $0x20] sm:$0xff]  ;;  %v3549_v15 = vpop.f32.mrf.mxu0  ;;  %v718_v19 = vmax.f32 %v686_v1, 0.0  ;;  %v1054_v24 = vpack.c.bf16 %v1024_v11, %v1023_v5 }
  0xfd   : > { %849 = vst [vmem:[#allocation2 + $0x49] sm:$0xff] %v762_v3  ;;  %850 = vst [vmem:[#allocation2 + $0x51] sm:$0xff] %v763_v4  ;;  %v1053_v16 = vpack.c.bf16 %v1022_v8, %v1021_v7  ;;  %v653_v17 = vmul.f32 %v3549_v15, %v4120_v10  ;;  %v721_v20 = vmax.f32 %v689_v12, 0.0  ;;  %v687_v21 = vadd.f32 %v4126_v13, %v648_v14  ;;  %v975_v38 = vld [vmem:[#allocation2 + $0x1a] sm:$0xff]  ;;  %v976_v40 = vld [vmem:[#allocation2 + $0x22] sm:$0xff] }
  0xfe   : > { %v553_v22 = vpop.f32.mrf.mxu0  ;;  %v4207_v55 = vpack.c.bf16 %v976_v40, %v975_v38  ;;  %v3747_v4 = vld [vmem:[%s4926_s4 + $0x1a0] sm:$0xff]   ;;  %v3749_v7 = vld [vmem:[%s4926_s4 + $0x1d8] sm:$0xff]   ;;  %v3753_v40 = vld [vmem:[%s4926_s4 + $0x190] sm:$0xff]  }
  0xff   : > { %2079 = vmatprep.mubr.bf16.mxu0 %v1053_v16  ;;  %1927 = vmatmul.mubr.bf16.gmra.mxu1 %v1053_v16  ;;  %v692_v25 = vadd.f32 %v4126_v13, %v653_v17  ;;  %v651_v26 = vmul.f32 %v4120_v10, %v553_v22  ;;  %v4182_v27 = vpack.c.bf16 %v721_v20, %v720_v6  ;;  %v719_v28 = vmax.f32 %v687_v21, 0.0  ;;  %v977_v8 = vld [vmem:[#allocation2 + $0x32] sm:$0xff] }
 0x100   : > { %2080 = vmatmul.mubr.bf16.vlgmr.msra.gmra.mxu0 %v1005_v9  ;;  %1934 = vmatprep.mubr.bf16.mxu1 %v4139_v31  ;;  %v3550_v29 = vpop.f32.mrf.mxu0  ;;  %v978_v9 = vld [vmem:[#allocation2 + $0x3a] sm:$0xff] }
 0x101   : > { %2087 = vmatprep.mubr.bf16.mxu0 %v1054_v24  ;;  %v690_v30 = vadd.f32 %v4126_v13, %v651_v26  ;;  %v654_v32 = vmul.f32 %v3550_v29, %v4120_v10  ;;  %3392 = vmatpush3.bf16.msra.mxu0 %v3735_v18  ;;  %v768_v34 = vunpack.c.l.bf16 %v4182_v27  ;;  %v769_v35 = vunpack.c.h.bf16 %v4182_v27 }
 0x102   : > { %v4191_v36 = vpack.c.bf16 %v719_v28, %v718_v19  ;;  %v556_v31 = vpop.f32.mrf.mxu0  ;;  %3393 = vmatprep.subr.bf16.mxu0 %v3737_v23  ;;  %v724_v41 = vmax.f32 %v692_v25, 0.0  ;;  %v3751_v23 = vld [vmem:[%s4926_s4 + $0x198] sm:$0xff]   ;;  %v3752_v28 = vld [vmem:[%s4926_s4 + $0x1d0] sm:$0xff]  }
 0x103   : > { %v693_v42 = vadd.f32 %v4126_v13, %v654_v32  ;;  %v652_v43 = vmul.f32 %v4120_v10, %v556_v31  ;;  %855 = vst [vmem:[#allocation2 + $0x91] sm:$0xff] %v768_v34  ;;  %856 = vst [vmem:[#allocation2 + $0x99] sm:$0xff] %v769_v35  ;;  %v722_v48 = vmax.f32 %v690_v30, 0.0  ;;  %v1027_v15 = vld [vmem:[#allocation2 + $0x60] sm:$0xff]  ;;  %v1028_v16 = vld [vmem:[#allocation2 + $0x68] sm:$0xff] }
 0x104   : > { %v766_v44 = vunpack.c.l.bf16 %v4191_v36  ;;  %v767_v45 = vunpack.c.h.bf16 %v4191_v36  ;;  %v1025_v46 = vld [vmem:[#allocation2 + $0x48] sm:$0xff]  ;;  %v1026_v47 = vld [vmem:[#allocation2 + $0x50] sm:$0xff]  ;;  %v3553_v49 = vpop.f32.mrf.mxu0  ;;  %v4246_v29 = vpack.c.bf16 %v1028_v16, %v1027_v15 }
 0x105   : > { %v4200_v50 = vpack.c.bf16 %v1026_v47, %v1025_v46  ;;  %v725_v51 = vmax.f32 %v693_v42, 0.0  ;;  %v691_v52 = vadd.f32 %v4126_v13, %v652_v43  ;;  %v657_v53 = vmul.f32 %v3553_v49, %v4120_v10  ;;  %3394 = vmatpush3.bf16.msra.mxu0 %v3739_v33  ;;  %v979_v31 = vld [vmem:[#allocation2 + $0x4a] sm:$0xff] }
 0x106   : > { %853 = vst [vmem:[#allocation2 + $0x79] sm:$0xff] %v766_v44  ;;  %854 = vst [vmem:[#allocation2 + $0x81] sm:$0xff] %v767_v45  ;;  %v569_v57 = vpop.f32.mrf.mxu0  ;;  %3395 = vmatprep.subr.bf16.mxu0 %v3741_v37 }
 0x107   : > { %1935 = vmatmul.mubr.bf16.gmra.mxu1 %v1054_v24  ;;  %v4212_v60 = vpack.c.bf16 %v725_v51, %v724_v41  ;;  %v723_v61 = vmax.f32 %v691_v52, 0.0  ;;  %v655_v62 = vmul.f32 %v4120_v10, %v569_v57  ;;  %v696_v63 = vadd.f32 %v4126_v13, %v657_v53  ;;  %v980_v41 = vld [vmem:[#allocation2 + $0x52] sm:$0xff] }
 0x108   : > { %2088 = vmatmul.mubr.bf16.gmra.mxu0 %v4207_v55  ;;  %1942 = vmatprep.mubr.bf16.mxu1 %v4161_v59  ;;  %v3554_v0 = vpop.f32.mrf.mxu0  ;;  %v4240_v24 = vpack.c.bf16 %v978_v9, %v977_v8  ;;  %v4271_v57 = vpack.c.bf16 %v980_v41, %v979_v31 }
 0x109   : > { %2095 = vmatprep.mubr.bf16.mxu0 %v4200_v50  ;;  %v772_v1 = vunpack.c.l.bf16 %v4212_v60  ;;  %v773_v2 = vunpack.c.h.bf16 %v4212_v60  ;;  %v4221_v3 = vpack.c.bf16 %v723_v61, %v722_v48  ;;  %3396 = vmatpush3.bf16.msra.mxu0 %v3743_v54  ;;  %v694_v5 = vadd.f32 %v4126_v13, %v655_v62  ;;  %v3756_v62 = vld [vmem:[%s4926_s4 + $0x188] sm:$0xff]  }
 0x10a   : > { %v658_v59 = vmul.f32 %v3554_v0, %v4120_v10  ;;  %v572_v6 = vpop.f32.mrf.mxu0  ;;  %3397 = vmatprep.subr.bf16.mxu0 %v3745_v58  ;;  %v728_v17 = vmax.f32 %v696_v63, 0.0 }
 0x10b   : > { %859 = vst [vmem:[#allocation2 + $0xc1] sm:$0xff] %v772_v1  ;;  %860 = vst [vmem:[#allocation2 + $0xc9] sm:$0xff] %v773_v2  ;;  %v770_v11 = vunpack.c.l.bf16 %v4221_v3  ;;  %v771_v12 = vunpack.c.h.bf16 %v4221_v3  ;;  %v656_v14 = vmul.f32 %v4120_v10, %v572_v6  ;;  %v726_v20 = vmax.f32 %v694_v5, 0.0 }
 0x10c   : > { %v697_v18 = vadd.f32 %v4126_v13, %v658_v59  ;;  %v3557_v19 = vpop.f32.mrf.mxu0 }
 0x10d   : > { %857 = vst [vmem:[#allocation2 + $0xa9] sm:$0xff] %v770_v11  ;;  %858 = vst [vmem:[#allocation2 + $0xb1] sm:$0xff] %v771_v12  ;;  %v695_v21 = vadd.f32 %v4126_v13, %v656_v14  ;;  %v661_v22 = vmul.f32 %v3557_v19, %v4120_v10  ;;  %3398 = vmatpush3.bf16.msra.mxu0 %v3747_v4  ;;  %v1029_v42 = vld [vmem:[#allocation2 + $0x78] sm:$0xff]  ;;  %v1030_v43 = vld [vmem:[#allocation2 + $0x80] sm:$0xff] }
 0x10e   : > { %v729_v25 = vmax.f32 %v697_v18, 0.0  ;;  %v585_v26 = vpop.f32.mrf.mxu0  ;;  %3399 = vmatprep.subr.bf16.mxu0 %v3749_v7  ;;  %v4273_v58 = vpack.c.bf16 %v1030_v43, %v1029_v42  ;;  %v3757_v4 = vld [vmem:[%s4926_s4 + $0x1c0] sm:$0xff]   ;;  %v982_v18 = vld [vmem:[#allocation2 + $0x6a] sm:$0xff] }
 0x10f   : > { %1943 = vmatmul.mubr.bf16.gmra.mxu1 %v4200_v50  ;;  %v727_v30 = vmax.f32 %v695_v21, 0.0  ;;  %v659_v32 = vmul.f32 %v4120_v10, %v585_v26  ;;  %v700_v34 = vadd.f32 %v4126_v13, %v661_v22  ;;  %v3758_v12 = vld [vmem:[%s4926_s4 + $0x180] sm:$0xff]   ;;  %v1031_v22 = vld [vmem:[#allocation2 + $0x90] sm:$0xff] }
 0x110   : > { %2096 = vmatmul.mubr.bf16.gmra.mxu0 %v4240_v24  ;;  %1950 = vmatprep.mubr.bf16.mxu1 %v4158_v56  ;;  %v4251_v33 = vpack.c.bf16 %v729_v25, %v728_v17  ;;  %v3558_v35 = vpop.f32.mrf.mxu0  ;;  %v3755_v56 = vld [vmem:[%s4926_s4 + $0x1c8] sm:$0xff]  }
 0x111   : > { %2103 = vmatprep.mubr.bf16.mxu0 %v4246_v29  ;;  %v4255_v37 = vpack.c.bf16 %v727_v30, %v726_v20  ;;  %v662_v38 = vmul.f32 %v3558_v35, %v4120_v10  ;;  %3400 = vmatpush3.bf16.msra.mxu0 %v3751_v23  ;;  %v698_v46 = vadd.f32 %v4126_v13, %v659_v32  ;;  %v732_v51 = vmax.f32 %v700_v34, 0.0  ;;  %v981_v17 = vld [vmem:[#allocation2 + $0x62] sm:$0xff]  ;;  %v1032_v23 = vld [vmem:[#allocation2 + $0x98] sm:$0xff] }
 0x112   : > { %v776_v44 = vunpack.c.l.bf16 %v4251_v33  ;;  %v777_v45 = vunpack.c.h.bf16 %v4251_v33  ;;  %v588_v47 = vpop.f32.mrf.mxu0  ;;  %3401 = vmatprep.subr.bf16.mxu0 %v3752_v28  ;;  %v4306_v31 = vpack.c.bf16 %v982_v18, %v981_v17  ;;  %v1035_v17 = vld [vmem:[#allocation2 + $0xc0] sm:$0xff]  ;;  %v1036_v18 = vld [vmem:[#allocation2 + $0xc8] sm:$0xff] }
 0x113   : > { %v774_v48 = vunpack.c.l.bf16 %v4255_v37  ;;  %v775_v49 = vunpack.c.h.bf16 %v4255_v37  ;;  %v701_v52 = vadd.f32 %v4126_v13, %v662_v38  ;;  %v660_v53 = vmul.f32 %v4120_v10, %v588_v47 }
 0x114   : > { %863 = vst [vmem:[#allocation2 + $0xf1] sm:$0xff] %v776_v44  ;;  %864 = vst [vmem:[#allocation2 + $0xf9] sm:$0xff] %v777_v45  ;;  %v3561_v54 = vpop.f32.mrf.mxu0  ;;  %v730_v63 = vmax.f32 %v698_v46, 0.0 }
 0x115   : > { %861 = vst [vmem:[#allocation2 + $0xd9] sm:$0xff] %v774_v48  ;;  %862 = vst [vmem:[#allocation2 + $0xe1] sm:$0xff] %v775_v49  ;;  %v665_v61 = vmul.f32 %v3561_v54, %v4120_v10  ;;  %3402 = vmatpush3.bf16.msra.mxu0 %v3753_v40  ;;  %v733_v0 = vmax.f32 %v701_v52, 0.0  ;;  %v699_v1 = vadd.f32 %v4126_v13, %v660_v53  ;;  %v1033_v48 = vld [vmem:[#allocation2 + $0xa8] sm:$0xff]  ;;  %v1034_v49 = vld [vmem:[#allocation2 + $0xb0] sm:$0xff] }
 0x116   : > { %v601_v2 = vpop.f32.mrf.mxu0  ;;  %3403 = vmatprep.subr.bf16.mxu0 %v3755_v56  ;;  %v4310_v40 = vpack.c.bf16 %v1032_v23, %v1031_v22  ;;  %v983_v54 = vld [vmem:[#allocation2 + $0x7a] sm:$0xff]  ;;  %v987_v23 = vld [vmem:[#allocation2 + $0xaa] sm:$0xff] }
 0x117   : > { %1951 = vmatmul.mubr.bf16.gmra.mxu1 %v4246_v29  ;;  %v704_v5 = vadd.f32 %v4126_v13, %v665_v61  ;;  %v663_v59 = vmul.f32 %v4120_v10, %v601_v2  ;;  %v4288_v6 = vpack.c.bf16 %v733_v0, %v732_v51  ;;  %v731_v7 = vmax.f32 %v699_v1, 0.0 }
 0x118   : > { %2104 = vmatmul.mubr.bf16.gmra.mxu0 %v4271_v57  ;;  %1958 = vmatprep.mubr.bf16.mxu1 %v4191_v36  ;;  %v3562_v8 = vpop.f32.mrf.mxu0  ;;  %v4329_v2 = vpack.c.bf16 %v1034_v49, %v1033_v48 }
 0x119   : > { %2111 = vmatprep.mubr.bf16.mxu0 %v4273_v58  ;;  %v702_v9 = vadd.f32 %v4126_v13, %v663_v59  ;;  %v666_v11 = vmul.f32 %v3562_v8, %v4120_v10  ;;  %3404 = vmatpush3.bf16.msra.mxu0 %v3756_v62  ;;  %v780_v14 = vunpack.c.l.bf16 %v4288_v6  ;;  %v781_v15 = vunpack.c.h.bf16 %v4288_v6 }
 0x11a   : > { %v4298_v36 = vpack.c.bf16 %v731_v7, %v730_v63  ;;  %v604_v16 = vpop.f32.mrf.mxu0  ;;  %3405 = vmatprep.subr.bf16.mxu0 %v3757_v4  ;;  %v736_v19 = vmax.f32 %v704_v5, 0.0 }
 0x11b   : > { %v705_v20 = vadd.f32 %v4126_v13, %v666_v11  ;;  %v664_v21 = vmul.f32 %v4120_v10, %v604_v16  ;;  %867 = vst [vmem:[#allocation2 + $0x121] sm:$0xff] %v780_v14  ;;  %868 = vst [vmem:[#allocation2 + $0x129] sm:$0xff] %v781_v15  ;;  %v734_v30 = vmax.f32 %v702_v9, 0.0  ;;  %v986_v14 = vld [vmem:[#allocation2 + $0x9a] sm:$0xff] }
 0x11c   : > { %v778_v25 = vunpack.c.l.bf16 %v4298_v36  ;;  %v779_v26 = vunpack.c.h.bf16 %v4298_v36  ;;  %v3565_v28 = vpop.f32.mrf.mxu0  ;;  %v1038_v22 = vld [vmem:[#allocation2 + $0xe0] sm:$0xff] }
 0x11d   : > { %v737_v32 = vmax.f32 %v705_v20, 0.0  ;;  %v703_v34 = vadd.f32 %v4126_v13, %v664_v21  ;;  %v669_v35 = vmul.f32 %v3565_v28, %v4120_v10  ;;  %3406 = vmatpush3.bf16.msra.mxu0 %v3758_v12  ;;  %v985_v12 = vld [vmem:[#allocation2 + $0x92] sm:$0xff]  ;;  %v3071_v20 = vpop.f32.mrf.mxu1 }
 0x11e   : > { %865 = vst [vmem:[#allocation2 + $0x109] sm:$0xff] %v778_v25  ;;  %866 = vst [vmem:[#allocation2 + $0x111] sm:$0xff] %v779_v26  ;;  %v617_v38 = vpop.f32.mrf.mxu0  ;;  %3567 = vmatprep.subr.bf16.mxu0 %v4148_v39  ;;  %v1037_v21 = vld [vmem:[#allocation2 + $0xd8] sm:$0xff] }
 0x11f   : > { %1959 = vmatmul.mubr.bf16.gmra.mxu1 %v4273_v58  ;;  %v4312_v56 = vpack.c.bf16 %v737_v32, %v736_v19  ;;  %v735_v41 = vmax.f32 %v703_v34, 0.0  ;;  %v667_v42 = vmul.f32 %v4120_v10, %v617_v38  ;;  %v708_v43 = vadd.f32 %v4126_v13, %v669_v35  ;;  %v988_v25 = vld [vmem:[#allocation2 + $0xb2] sm:$0xff]  ;;  %v3072_v26 = vpop.f32.mrf.mxu1  ;;  %v990_v34 = vld [vmem:[#allocation2 + $0xca] sm:$0xff] }
 0x120   : > { %2112 = vmatmul.mubr.bf16.gmra.mxu0 %v4306_v31  ;;  %1966 = vmatprep.mubr.bf16.mxu1 %v4182_v27  ;;  %v3566_v44 = vpop.f32.mrf.mxu0  ;;  %v984_v27 = vld [vmem:[#allocation2 + $0x82] sm:$0xff]  ;;  %v4349_v19 = vpack.c.bf16 %v1036_v18, %v1035_v17  ;;  %v4354_v28 = vadd.f32 %v3072_v26, %v3071_v20  ;;  %v4358_v32 = vpack.c.bf16 %v988_v25, %v987_v23  ;;  %v1039_v35 = vld [vmem:[#allocation2 + $0xf0] sm:$0xff]  ;;  %v1040_v38 = vld [vmem:[#allocation2 + $0xf8] sm:$0xff] }
 0x121   : > { %2119 = vmatprep.mubr.bf16.mxu0 %v4310_v40  ;;  %v784_v45 = vunpack.c.l.bf16 %v4312_v56  ;;  %v785_v46 = vunpack.c.h.bf16 %v4312_v56  ;;  %v4321_v47 = vpack.c.bf16 %v735_v41, %v734_v30  ;;  %v706_v51 = vadd.f32 %v4126_v13, %v667_v42 }
 0x122   : > { %v670_v52 = vmul.f32 %v3566_v44, %v4120_v10  ;;  %v620_v53 = vpop.f32.mrf.mxu0  ;;  %v740_v0 = vmax.f32 %v708_v43, 0.0  ;;  %v4332_v59 = vpack.c.bf16 %v984_v27, %v983_v54  ;;  %v4356_v30 = vpack.c.bf16 %v1038_v22, %v1037_v21 }
 0x123   : > { %871 = vst [vmem:[#allocation2 + $0x151] sm:$0xff] %v784_v45  ;;  %872 = vst [vmem:[#allocation2 + $0x159] sm:$0xff] %v785_v46  ;;  %v782_v61 = vunpack.c.l.bf16 %v4321_v47  ;;  %v783_v62 = vunpack.c.h.bf16 %v4321_v47  ;;  %v668_v63 = vmul.f32 %v4120_v10, %v620_v53  ;;  %v738_v4 = vmax.f32 %v706_v51, 0.0  ;;  %v991_v45 = vld [vmem:[#allocation2 + $0xda] sm:$0xff]  ;;  %v992_v46 = vld [vmem:[#allocation2 + $0xe2] sm:$0xff] }
 0x124   : > { %v709_v1 = vadd.f32 %v4126_v13, %v670_v52  ;;  %v4367_v42 = vpack.c.bf16 %v1040_v38, %v1039_v35  ;;  %v4374_v49 = vpack.c.bf16 %v992_v46, %v991_v45  ;;  %v993_v51 = vld [vmem:[#allocation2 + $0xf2] sm:$0xff]  ;;  %v1043_v52 = vld [vmem:[#allocation2 + $0x120] sm:$0xff]  ;;  %v1044_v53 = vld [vmem:[#allocation2 + $0x128] sm:$0xff] }
 0x125   : > { %869 = vst [vmem:[#allocation2 + $0x139] sm:$0xff] %v782_v61  ;;  %870 = vst [vmem:[#allocation2 + $0x141] sm:$0xff] %v783_v62  ;;  %v707_v5 = vadd.f32 %v4126_v13, %v668_v63  ;;  %v1041_v43 = vld [vmem:[#allocation2 + $0x108] sm:$0xff]  ;;  %v1042_v44 = vld [vmem:[#allocation2 + $0x110] sm:$0xff]  ;;  %v4383_v27 = vpack.c.bf16 %v1044_v53, %v1043_v52 }
 0x126   : > { %v741_v7 = vmax.f32 %v709_v1, 0.0  ;;  %v4372_v48 = vpack.c.bf16 %v1042_v44, %v1041_v43  ;;  %v995_v63 = vld [vmem:[#allocation2 + $0x10a] sm:$0xff]  ;;  %v1070_v35 = vld [vmem:[#allocation2 + $0x21] sm:$0xff]  ;;  %v1215_v45 = vld [vmem:[#allocation2 + $0x39] sm:$0xff] }
 0x127   : > { %1967 = vmatmul.mubr.bf16.gmra.mxu1 %v4310_v40  ;;  %v739_v8 = vmax.f32 %v707_v5, 0.0  ;;  %v997_v5 = vld [vmem:[#allocation2 + $0x122] sm:$0xff]  ;;  %v1214_v44 = vld [vmem:[#allocation2 + $0x31] sm:$0xff] }
 0x128   : > { %2120 = vmatmul.mubr.bf16.gmra.mxu0 %v4332_v59  ;;  %1974 = vmatprep.mubr.bf16.mxu1 %v4221_v3  ;;  %v4337_v10 = vpack.c.bf16 %v741_v7, %v740_v0  ;;  %v4346_v3 = vpack.c.bf16 %v986_v14, %v985_v12  ;;  %v996_v0 = vld [vmem:[#allocation2 + $0x112] sm:$0xff]  ;;  %v998_v7 = vld [vmem:[#allocation2 + $0x12a] sm:$0xff]  ;;  %v1246_v52 = vpack.c.bf16 %v1215_v45, %v1214_v44 }
 0x129   : > { %2127 = vmatprep.mubr.bf16.mxu0 %v4329_v2  ;;  %v4340_v9 = vpack.c.bf16 %v739_v8, %v738_v4  ;;  %v4390_v4 = vpack.c.bf16 %v996_v0, %v995_v63  ;;  %v1166_v53 = vld [vmem:[#allocation2 + $0x30] sm:$0xff] }
 0x12a   : > { %v788_v11 = vunpack.c.l.bf16 %v4337_v10  ;;  %v789_v13 = vunpack.c.h.bf16 %v4337_v10  ;;  %v1047_v8 = vld [vmem:[#allocation2 + $0x150] sm:$0xff]  ;;  %v1002_v22 = vld [vmem:[#allocation2 + $0x15a] sm:$0xff] }
 0x12b   : > { %v786_v15 = vunpack.c.l.bf16 %v4340_v9  ;;  %v787_v16 = vunpack.c.h.bf16 %v4340_v9  ;;  %v1001_v21 = vld [vmem:[#allocation2 + $0x152] sm:$0xff] }
 0x12c   : > { %875 = vst [vmem:[#allocation2 + $0x181] sm:$0xff] %v788_v11  ;;  %876 = vst [vmem:[#allocation2 + $0x189] sm:$0xff] %v789_v13  ;;  %v1045_v61 = vld [vmem:[#allocation2 + $0x138] sm:$0xff]  ;;  %v1046_v62 = vld [vmem:[#allocation2 + $0x140] sm:$0xff]  ;;  %v4396_v13 = vpack.c.bf16 %v998_v7, %v997_v5  ;;  %v4412_v26 = vpack.c.bf16 %v1002_v22, %v1001_v21 }
 0x12d   : > { %873 = vst [vmem:[#allocation2 + $0x169] sm:$0xff] %v786_v15  ;;  %874 = vst [vmem:[#allocation2 + $0x171] sm:$0xff] %v787_v16  ;;  %v4388_v1 = vpack.c.bf16 %v1046_v62, %v1045_v61  ;;  %v1048_v11 = vld [vmem:[#allocation2 + $0x158] sm:$0xff]  ;;  %v1000_v17 = vld [vmem:[#allocation2 + $0x142] sm:$0xff] }
 0x12e   : > { %v4399_v12 = vpack.c.bf16 %v1048_v11, %v1047_v8  ;;  %v999_v16 = vld [vmem:[#allocation2 + $0x13a] sm:$0xff]  ;;  %v1216_v62 = vld [vmem:[#allocation2 + $0x49] sm:$0xff]  ;;  %v1217_v63 = vld [vmem:[#allocation2 + $0x51] sm:$0xff] }
 0x12f   : > { %1975 = vmatmul.mubr.bf16.gmra.mxu1 %v4329_v2  ;;  %v4406_v20 = vpack.c.bf16 %v1000_v17, %v999_v16  ;;  %v1167_v61 = vld [vmem:[#allocation2 + $0x38] sm:$0xff]  ;;  %v3761_v5 = vld [vmem:[%s4926_s4 + $0x220] sm:$0xff]   ;;  %v1247_v7 = vpack.c.bf16 %v1217_v63, %v1216_v62  ;;  %v1219_v11 = vld [vmem:[#allocation2 + $0x69] sm:$0xff] }
 0x130   : > { %2128 = vmatmul.mubr.bf16.gmra.mxu0 %v4346_v3  ;;  %1982 = vmatprep.mubr.bf16.mxu1 %v4212_v60  ;;  %v989_v60 = vld [vmem:[#allocation2 + $0xc2] sm:$0xff]  ;;  %v1198_v0 = vpack.c.bf16 %v1167_v61, %v1166_v53  ;;  %v1222_v17 = vld [vmem:[#allocation2 + $0x91] sm:$0xff]  ;;  %v1223_v21 = vld [vmem:[#allocation2 + $0x99] sm:$0xff] }
 0x131   : > { %2135 = vmatprep.mubr.bf16.mxu0 %v4349_v19  ;;  %v4364_v41 = vpack.c.bf16 %v990_v34, %v989_v60  ;;  %v1069_v34 = vld [vmem:[#allocation2 + $0x19] sm:$0xff]  ;;  %v1218_v8 = vld [vmem:[#allocation2 + $0x61] sm:$0xff]  ;;  %v1250_v22 = vpack.c.bf16 %v1223_v21, %v1222_v17 }
 0x132   : > { %v1101_v46 = vpack.c.bf16 %v1070_v35, %v1069_v34  ;;  %v1221_v16 = vld [vmem:[#allocation2 + $0x81] sm:$0xff]  ;;  %v1227_v34 = vld [vmem:[#allocation2 + $0xc9] sm:$0xff] }
 0x133   : > { %v1051_v23 = vld [vmem:[#allocation2 + $0x180] sm:$0xff]  ;;  %v1052_v25 = vld [vmem:[#allocation2 + $0x188] sm:$0xff] }
 0x134   : > { %v1049_v14 = vld [vmem:[#allocation2 + $0x168] sm:$0xff]  ;;  %v1050_v15 = vld [vmem:[#allocation2 + $0x170] sm:$0xff]  ;;  %v4415_v60 = vpack.c.bf16 %v1052_v25, %v1051_v23 }
 0x135   : > { %v4404_v18 = vpack.c.bf16 %v1050_v15, %v1049_v14  ;;  %v1003_v38 = vld [vmem:[#allocation2 + $0x16a] sm:$0xff]  ;;  %v1004_v43 = vld [vmem:[#allocation2 + $0x172] sm:$0xff]  ;;  %v1226_v25 = vld [vmem:[#allocation2 + $0xc1] sm:$0xff] }
 0x136   : > { %v3763_v14 = vld [vmem:[%s4926_s4 + $0x210] sm:$0xff]   ;;  %v1220_v15 = vld [vmem:[#allocation2 + $0x79] sm:$0xff]  ;;  %v1252_v35 = vpack.c.bf16 %v1227_v34, %v1226_v25  ;;  %v1091_v63 = vld [vmem:[#allocation2 + $0x121] sm:$0xff] }
 0x137   : > { %1983 = vmatmul.mubr.bf16.gmra.mxu1 %v4349_v19 }
 0x138   : > { %2136 = vmatmul.mubr.bf16.gmra.mxu0 %v4358_v32  ;;  %1990 = vmatprep.mubr.bf16.mxu1 %v4255_v37 }
 0x139   : > { %2143 = vmatprep.mubr.bf16.mxu0 %v4356_v30 }
 0x13f   : > { %1991 = vmatmul.mubr.bf16.gmra.mxu1 %v4356_v30 }
 0x140   : > { %2144 = vmatmul.mubr.bf16.gmra.mxu0 %v4364_v41  ;;  %1998 = vmatprep.mubr.bf16.mxu1 %v4251_v33  ;;  %v994_v33 = vld [vmem:[#allocation2 + $0xfa] sm:$0xff] }
 0x141   : > { %2151 = vmatprep.mubr.bf16.mxu0 %v4367_v42  ;;  %v4380_v54 = vpack.c.bf16 %v994_v33, %v993_v51  ;;  %v4420_v51 = vpack.c.bf16 %v1004_v43, %v1003_v38  ;;  %v3759_v33 = vld [vmem:[%s4926_s4 + $0x230] sm:$0xff]  }
 0x147   : > { %1999 = vmatmul.mubr.bf16.gmra.mxu1 %v4367_v42 }
 0x148   : > { %2152 = vmatmul.mubr.bf16.gmra.mxu0 %v4374_v49  ;;  %2006 = vmatprep.mubr.bf16.mxu1 %v4298_v36 }
 0x149   : > { %2159 = vmatprep.mubr.bf16.mxu0 %v4372_v48 }
 0x14f   : > { %2007 = vmatmul.mubr.bf16.gmra.mxu1 %v4372_v48 }
 0x150   : > { %2160 = vmatmul.mubr.bf16.gmra.mxu0 %v4380_v54  ;;  %2014 = vmatprep.mubr.bf16.mxu1 %v4288_v6 }
 0x151   : > { %2167 = vmatprep.mubr.bf16.mxu0 %v4383_v27 }
 0x157   : > { %2015 = vmatmul.mubr.bf16.gmra.mxu1 %v4383_v27 }
 0x158   : > { %2168 = vmatmul.mubr.bf16.gmra.mxu0 %v4390_v4  ;;  %2022 = vmatprep.mubr.bf16.mxu1 %v4321_v47 }
 0x159   : > { %2175 = vmatprep.mubr.bf16.mxu0 %v4388_v1 }
 0x15f   : > { %2023 = vmatmul.mubr.bf16.gmra.mxu1 %v4388_v1 }
 0x160   : > { %2176 = vmatmul.mubr.bf16.gmra.mxu0 %v4396_v13  ;;  %2030 = vmatprep.mubr.bf16.mxu1 %v4312_v56 }
 0x161   : > { %2183 = vmatprep.mubr.bf16.mxu0 %v4399_v12 }
 0x167   : > { %2031 = vmatmul.mubr.bf16.gmra.mxu1 %v4399_v12 }
 0x168   : > { %2184 = vmatmul.mubr.bf16.gmra.mxu0 %v4406_v20  ;;  %2038 = vmatprep.mubr.bf16.mxu1 %v4340_v9 }
 0x169   : > { %2191 = vmatprep.mubr.bf16.mxu0 %v4404_v18 }
 0x16f   : > { %2039 = vmatmul.mubr.bf16.gmra.mxu1 %v4404_v18 }
 0x170   : > { %2192 = vmatmul.mubr.bf16.gmra.mxu0 %v4412_v26  ;;  %2240 = vmatprep.mubr.bf16.mxu1 %v4207_v55  ;;  %v3760_v55 = vld [vmem:[%s4926_s4 + $0x228] sm:$0xff]  }
 0x171   : > { %2199 = vmatprep.mubr.bf16.mxu0 %v4415_v60 }
 0x177   : > { %2241 = vmatmul.mubr.bf16.vlgmr.msra.gmra.mxu1 %v1101_v46 }
 0x178   : > { %2200 = vmatmul.mubr.bf16.gmra.mxu0 %v4420_v51  ;;  %3623 = vmatpush3.bf16.msra.mxu1 %v4148_v39 }
 0x179   : > { %2248 = vmatprep.mubr.bf16.mxu1 %v4240_v24  ;;  %2401 = vmatprep.mubr.bf16.mxu0 %v1246_v52  ;;  %v3762_v24 = vld [vmem:[%s4926_s4 + $0x218] sm:$0xff]  }
 0x17a   : > { %3616 = vmatprep.subr.bf16.mxu1 %v3759_v33 }
 0x17c   : > { %3624 = vmatpush3.bf16.msra.mxu1 %v3759_v33 }
 0x17d   : > { %3617 = vmatprep.subr.bf16.mxu1 %v3760_v55 }
 0x17f   : > { %2249 = vmatmul.mubr.bf16.gmra.mxu1 %v1246_v52 }
 0x180   : > { %2402 = vmatmul.mubr.bf16.vlgmr.msra.gmra.mxu0 %v1198_v0  ;;  %2256 = vmatprep.mubr.bf16.mxu1 %v4271_v57  ;;  %v1248_v57 = vpack.c.bf16 %v1219_v11, %v1218_v8  ;;  %v1092_v0 = vld [vmem:[#allocation2 + $0x129] sm:$0xff] }
 0x181   : > { %2409 = vmatprep.mubr.bf16.mxu0 %v1247_v7  ;;  %3625 = vmatpush3.bf16.msra.mxu1 %v3760_v55  ;;  %v1112_v11 = vpack.c.bf16 %v1092_v0, %v1091_v63 }
 0x182   : > { %3618 = vmatprep.subr.bf16.mxu1 %v3761_v5  ;;  %3568 = vmatpush3.bf16.msra.mxu0 %v4148_v39  ;;  %v3764_v39 = vld [vmem:[%s4926_s4 + $0x208] sm:$0xff]  }
 0x183   : > { %3569 = vmatprep.subr.bf16.mxu0 %v3759_v33 }
 0x185   : > { %3626 = vmatpush3.bf16.msra.mxu1 %v3761_v5 }
 0x186   : > { %3619 = vmatprep.subr.bf16.mxu1 %v3762_v24  ;;  %3570 = vmatpush3.bf16.msra.mxu0 %v3759_v33 }
 0x187   : > { %2257 = vmatmul.mubr.bf16.gmra.mxu1 %v1247_v7  ;;  %3571 = vmatprep.subr.bf16.mxu0 %v3760_v55 }
 0x188   : > { %2410 = vmatmul.mubr.bf16.gmra.mxu0 %v4200_v50  ;;  %2264 = vmatprep.mubr.bf16.mxu1 %v4306_v31  ;;  %v3765_v50 = vld [vmem:[%s4926_s4 + $0x200] sm:$0xff]   ;;  %v1249_v31 = vpack.c.bf16 %v1221_v16, %v1220_v15 }
 0x189   : > { %2417 = vmatprep.mubr.bf16.mxu0 %v1248_v57  ;;  %3627 = vmatpush3.bf16.msra.mxu1 %v3762_v24 }
 0x18a   : > { %3620 = vmatprep.subr.bf16.mxu1 %v3763_v14  ;;  %3572 = vmatpush3.bf16.msra.mxu0 %v3760_v55 }
 0x18b   : > { %3573 = vmatprep.subr.bf16.mxu0 %v3761_v5 }
 0x18d   : > { %3628 = vmatpush3.bf16.msra.mxu1 %v3763_v14 }
 0x18e   : > { %3621 = vmatprep.subr.bf16.mxu1 %v3764_v39  ;;  %3574 = vmatpush3.bf16.msra.mxu0 %v3761_v5 }
 0x18f   : > { %2265 = vmatmul.mubr.bf16.gmra.mxu1 %v1248_v57  ;;  %3575 = vmatprep.subr.bf16.mxu0 %v3762_v24 }
 0x190   : > { %2418 = vmatmul.mubr.bf16.gmra.mxu0 %v4246_v29  ;;  %2272 = vmatprep.mubr.bf16.mxu1 %v4332_v59  ;;  %v1224_v29 = vld [vmem:[#allocation2 + $0xa9] sm:$0xff]  ;;  %v1225_v59 = vld [vmem:[#allocation2 + $0xb1] sm:$0xff] }
 0x191   : > { %2425 = vmatprep.mubr.bf16.mxu0 %v1249_v31  ;;  %3629 = vmatpush3.bf16.msra.mxu1 %v3764_v39  ;;  %v1251_v23 = vpack.c.bf16 %v1225_v59, %v1224_v29 }
 0x192   : > { %3622 = vmatprep.subr.bf16.mxu1 %v3765_v50  ;;  %3576 = vmatpush3.bf16.msra.mxu0 %v3762_v24 }
 0x193   : > { %3577 = vmatprep.subr.bf16.mxu0 %v3763_v14 }
 0x195   : > { %3630 = vmatpush3.bf16.msra.mxu1 %v3765_v50 }
 0x196   : > { %3578 = vmatpush3.bf16.msra.mxu0 %v3763_v14 }
 0x197   : > { %2273 = vmatmul.mubr.bf16.gmra.mxu1 %v1249_v31  ;;  %3579 = vmatprep.subr.bf16.mxu0 %v3764_v39 }
 0x198   : > { %2426 = vmatmul.mubr.bf16.gmra.mxu0 %v4273_v58  ;;  %2280 = vmatprep.mubr.bf16.mxu1 %v4346_v3  ;;  %v1230_v58 = vld [vmem:[#allocation2 + $0xf1] sm:$0xff] }
 0x199   : > { %2433 = vmatprep.mubr.bf16.mxu0 %v1250_v22 }
 0x19a   : > { %3580 = vmatpush3.bf16.msra.mxu0 %v3764_v39 }
 0x19b   : > { %3581 = vmatprep.subr.bf16.mxu0 %v3765_v50 }
 0x19e   : > { %3582 = vmatpush3.bf16.msra.mxu0 %v3765_v50 }
 0x19f   : > { %2281 = vmatmul.mubr.bf16.gmra.mxu1 %v1250_v22 }
 0x1a0   : > { %2434 = vmatmul.mubr.bf16.gmra.mxu0 %v4310_v40  ;;  %2288 = vmatprep.mubr.bf16.mxu1 %v4358_v32  ;;  %v1231_v40 = vld [vmem:[#allocation2 + $0xf9] sm:$0xff] }
 0x1a1   : > { %2441 = vmatprep.mubr.bf16.mxu0 %v1251_v23  ;;  %v1254_v3 = vpack.c.bf16 %v1231_v40, %v1230_v58 }
 0x1a7   : > { %2289 = vmatmul.mubr.bf16.gmra.mxu1 %v1251_v23 }
 0x1a8   : > { %2442 = vmatmul.mubr.bf16.gmra.mxu0 %v4329_v2  ;;  %2296 = vmatprep.mubr.bf16.mxu1 %v4364_v41  ;;  %v3074_v2 = vpop.f32.mrf.mxu1 }
 0x1a9   : > { %2449 = vmatprep.mubr.bf16.mxu0 %v1252_v35 }
 0x1aa   : > { %v3075_v32 = vpop.f32.mrf.mxu1 }
 0x1ab   : > { %v3076_v52 = vadd.f32 %v3075_v32, %v3074_v2  ;;  %v1096_v2 = vld [vmem:[#allocation2 + $0x159] sm:$0xff] }
 0x1af   : > { %2297 = vmatmul.mubr.bf16.gmra.mxu1 %v1252_v35 }
 0x1b0   : > { %2450 = vmatmul.mubr.bf16.gmra.mxu0 %v4349_v19  ;;  %2304 = vmatprep.mubr.bf16.mxu1 %v4374_v49 }
 0x1b1   : > { %2457 = vmatprep.mubr.bf16.mxu0 %v4255_v37 }
 0x1b7   : > { %2305 = vmatmul.mubr.bf16.gmra.mxu1 %v4255_v37 }
 0x1b8   : > { %2458 = vmatmul.mubr.bf16.gmra.mxu0 %v4356_v30  ;;  %2312 = vmatprep.mubr.bf16.mxu1 %v4380_v54 }
 0x1b9   : > { %2465 = vmatprep.mubr.bf16.mxu0 %v1254_v3 }
 0x1bf   : > { %v3077_v41 = vpop.f32.mrf.mxu1  ;;  %2313 = vmatmul.mubr.bf16.gmra.mxu1 %v1254_v3  ;;  %v1095_v3 = vld [vmem:[#allocation2 + $0x151] sm:$0xff] }
 0x1c0   : > { %v3183_v38 = vpop.f32.mrf.mxu0  ;;  %2466 = vmatmul.mubr.bf16.gmra.mxu0 %v4367_v42  ;;  %2320 = vmatprep.mubr.bf16.mxu1 %v4390_v4 }
 0x1c1   : > { %2473 = vmatprep.mubr.bf16.mxu0 %v4298_v36  ;;  %v3078_v19 = vpop.f32.mrf.mxu1 }
 0x1c2   : > { %v3079_v49 = vadd.f32 %v3078_v19, %v3077_v41  ;;  %v3184_v37 = vpop.f32.mrf.mxu0 }
 0x1c3   : > { %v3185_v43 = vadd.f32 %v3184_v37, %v3183_v38  ;;  %v3080_v44 = vpop.f32.mrf.mxu1 }
 0x1c4   : > { %v3186_v30 = vpop.f32.mrf.mxu0 }
 0x1c5   : > { %v4468_v54 = vadd.f32 %v3185_v43, %v4354_v28  ;;  %v3081_v45 = vpop.f32.mrf.mxu1 }
 0x1c6   : > { %v3082_v46 = vadd.f32 %v3081_v45, %v3080_v44  ;;  %v3187_v33 = vpop.f32.mrf.mxu0 }
 0x1c7   : > { %v3188_v55 = vadd.f32 %v3187_v33, %v3186_v30  ;;  %v3083_v53 = vpop.f32.mrf.mxu1  ;;  %2321 = vmatmul.mubr.bf16.gmra.mxu1 %v4298_v36 }
 0x1c8   : > { %v3189_v42 = vpop.f32.mrf.mxu0  ;;  %2474 = vmatmul.mubr.bf16.gmra.mxu0 %v4372_v48  ;;  %2328 = vmatprep.mubr.bf16.mxu1 %v4396_v13 }
 0x1c9   : > { %v4473_v4 = vadd.f32 %v3188_v55, %v3076_v52  ;;  %2481 = vmatprep.mubr.bf16.mxu0 %v4288_v6  ;;  %v3084_v61 = vpop.f32.mrf.mxu1  ;;  %v1147_v55 = vld [vmem:[#allocation2 + $0x182] sm:$0xff] }
 0x1ca   : > { %v3085_v28 = vadd.f32 %v3084_v61, %v3083_v53  ;;  %v3190_v62 = vpop.f32.mrf.mxu0  ;;  %v1148_v53 = vld [vmem:[#allocation2 + $0x18a] sm:$0xff] }
 0x1cb   : > { %v3191_v5 = vadd.f32 %v3190_v62, %v3189_v42  ;;  %v3086_v7 = vpop.f32.mrf.mxu1 }
 0x1cc   : > { %v3192_v24 = vpop.f32.mrf.mxu0 }
 0x1cd   : > { %v4476_v8 = vadd.f32 %v3191_v5, %v3079_v49  ;;  %v3087_v36 = vpop.f32.mrf.mxu1  ;;  %v1114_v49 = vpack.c.bf16 %v1096_v2, %v1095_v3  ;;  %v1268_v3 = vld [vmem:[#allocation2 + $0x7a] sm:$0xff]  ;;  %v1269_v2 = vld [vmem:[#allocation2 + $0x82] sm:$0xff] }
 0x1ce   : > { %v3088_v14 = vadd.f32 %v3087_v36, %v3086_v7  ;;  %v3193_v48 = vpop.f32.mrf.mxu0  ;;  %v1099_v36 = vld [vmem:[#allocation2 + $0x181] sm:$0xff] }
 0x1cf   : > { %v3194_v57 = vadd.f32 %v3193_v48, %v3192_v24  ;;  %v3089_v13 = vpop.f32.mrf.mxu1  ;;  %2329 = vmatmul.mubr.bf16.gmra.mxu1 %v1112_v11  ;;  %v1100_v48 = vld [vmem:[#allocation2 + $0x189] sm:$0xff] }
 0x1d0   : > { %v3195_v39 = vpop.f32.mrf.mxu0  ;;  %2482 = vmatmul.mubr.bf16.gmra.mxu0 %v4383_v27  ;;  %2336 = vmatprep.mubr.bf16.mxu1 %v4406_v20 }
 0x1d1   : > { %v4480_v6 = vadd.f32 %v3194_v57, %v3082_v46  ;;  %2489 = vmatprep.mubr.bf16.mxu0 %v4321_v47  ;;  %v3090_v15 = vpop.f32.mrf.mxu1  ;;  %v1244_v57 = vld [vmem:[#allocation2 + $0x199] sm:$0xff] }
 0x1d2   : > { %v3091_v16 = vadd.f32 %v3090_v15, %v3089_v13  ;;  %v3196_v50 = vpop.f32.mrf.mxu0  ;;  %v1245_v13 = vld [vmem:[#allocation2 + $0x1a1] sm:$0xff] }
 0x1d3   : > { %v3197_v31 = vadd.f32 %v3196_v50, %v3195_v39  ;;  %v3092_v17 = vpop.f32.mrf.mxu1 }
 0x1d4   : > { %v3198_v21 = vpop.f32.mrf.mxu0 }
 0x1d5   : > { %v4483_v22 = vadd.f32 %v3197_v31, %v3085_v28  ;;  %v3093_v29 = vpop.f32.mrf.mxu1 }
 0x1d6   : > { %v3094_v59 = vadd.f32 %v3093_v29, %v3092_v17  ;;  %v3199_v23 = vpop.f32.mrf.mxu0  ;;  %v1116_v17 = vpack.c.bf16 %v1100_v48, %v1099_v36  ;;  %v1274_v48 = vld [vmem:[#allocation2 + $0xc2] sm:$0xff] }
 0x1d7   : > { %v3200_v25 = vadd.f32 %v3199_v23, %v3198_v21  ;;  %v3095_v34 = vpop.f32.mrf.mxu1  ;;  %2337 = vmatmul.mubr.bf16.gmra.mxu1 %v4321_v47  ;;  %v1261_v21 = vpack.c.bf16 %v1245_v13, %v1244_v57  ;;  %v1275_v57 = vld [vmem:[#allocation2 + $0xca] sm:$0xff] }
 0x1d8   : > { %v3201_v27 = vpop.f32.mrf.mxu0  ;;  %2490 = vmatmul.mubr.bf16.gmra.mxu0 %v4388_v1  ;;  %2344 = vmatprep.mubr.bf16.mxu1 %v4412_v26 }
 0x1d9   : > { %v4488_v20 = vadd.f32 %v3200_v25, %v3088_v14  ;;  %2497 = vmatprep.mubr.bf16.mxu0 %v4312_v56  ;;  %v3096_v35 = vpop.f32.mrf.mxu1 }
 0x1da   : > { %v3097_v58 = vadd.f32 %v3096_v35, %v3095_v34  ;;  %v3202_v40 = vpop.f32.mrf.mxu0 }
 0x1db   : > { %v3203_v32 = vadd.f32 %v3202_v40, %v3201_v27  ;;  %v3098_v41 = vpop.f32.mrf.mxu1 }
 0x1dc   : > { %v3204_v38 = vpop.f32.mrf.mxu0 }
 0x1dd   : > { %v4491_v19 = vadd.f32 %v3203_v32, %v3091_v16  ;;  %v3099_v47 = vpop.f32.mrf.mxu1  ;;  %v1266_v16 = vld [vmem:[#allocation2 + $0x62] sm:$0xff] }
 0x1de   : > { %v3100_v37 = vadd.f32 %v3099_v47, %v3098_v41  ;;  %v3205_v1 = vpop.f32.mrf.mxu0  ;;  %v1271_v47 = vld [vmem:[#allocation2 + $0x9a] sm:$0xff] }
 0x1df   : > { %v3206_v43 = vadd.f32 %v3205_v1, %v3204_v38  ;;  %v3101_v26 = vpop.f32.mrf.mxu1  ;;  %2345 = vmatmul.mubr.bf16.gmra.mxu1 %v1114_v49  ;;  %v1270_v38 = vld [vmem:[#allocation2 + $0x92] sm:$0xff] }
 0x1e0   : > { %v3207_v44 = vpop.f32.mrf.mxu0  ;;  %2498 = vmatmul.mubr.bf16.gmra.mxu0 %v4399_v12  ;;  %2352 = vmatprep.mubr.bf16.mxu1 %v4420_v51  ;;  %v4500_v12 = vpack.c.bf16 %v1148_v53, %v1147_v55 }
 0x1e1   : > { %v4495_v56 = vadd.f32 %v3206_v43, %v3094_v59  ;;  %2505 = vmatprep.mubr.bf16.mxu0 %v4340_v9  ;;  %v3102_v30 = vpop.f32.mrf.mxu1  ;;  %v1262_v43 = vld [vmem:[#allocation2 + $0x32] sm:$0xff] }
 0x1e2   : > { %v3103_v45 = vadd.f32 %v3102_v30, %v3101_v26  ;;  %v3208_v46 = vpop.f32.mrf.mxu0  ;;  %v1263_v26 = vld [vmem:[#allocation2 + $0x3a] sm:$0xff]  ;;  %v1297_v30 = vpack.c.bf16 %v1269_v2, %v1268_v3  ;;  %v1278_v2 = vld [vmem:[#allocation2 + $0xf2] sm:$0xff] }
 0x1e3   : > { %v3209_v33 = vadd.f32 %v3208_v46, %v3207_v44  ;;  %v3104_v52 = vpop.f32.mrf.mxu1  ;;  %v1294_v53 = vpack.c.bf16 %v1263_v26, %v1262_v43 }
 0x1e4   : > { %v3210_v42 = vpop.f32.mrf.mxu0 }
 0x1e5   : > { %v4498_v61 = vadd.f32 %v3209_v33, %v3097_v58  ;;  %v3105_v28 = vpop.f32.mrf.mxu1  ;;  %v1298_v33 = vpack.c.bf16 %v1271_v47, %v1270_v38 }
 0x1e6   : > { %v3106_v62 = vadd.f32 %v3105_v28, %v3104_v52  ;;  %v3211_v63 = vpop.f32.mrf.mxu0 }
 0x1e7   : > { %v3212_v51 = vadd.f32 %v3211_v63, %v3210_v42  ;;  %v3107_v0 = vpop.f32.mrf.mxu1  ;;  %2353 = vmatmul.mubr.bf16.gmra.mxu1 %v4340_v9  ;;  %v1267_v9 = vld [vmem:[#allocation2 + $0x6a] sm:$0xff] }
 0x1e8   : > { %v3213_v5 = vpop.f32.mrf.mxu0  ;;  %2506 = vmatmul.mubr.bf16.gmra.mxu0 %v4404_v18  ;;  %2360 = vmatprep.mubr.bf16.mxu1 %v4500_v12 }
 0x1e9   : > { %v4505_v7 = vadd.f32 %v3212_v51, %v3100_v37  ;;  %2513 = vmatprep.mubr.bf16.mxu0 %v4337_v10  ;;  %v3108_v24 = vpop.f32.mrf.mxu1  ;;  %v1296_v10 = vpack.c.bf16 %v1267_v9, %v1266_v16  ;;  %v3766_v37 = vld [vmem:[#allocation2] sm:$0xff] }
 0x1ea   : > { %v3109_v11 = vadd.f32 %v3108_v24, %v3107_v0  ;;  %v3214_v14 = vpop.f32.mrf.mxu0  ;;  %v1213_v1 = vpack.c.bf16 %v3766_v37, %v3766_v37  ;;  %v1264_v0 = vld [vmem:[#allocation2 + $0x4a] sm:$0xff]  ;;  %v1273_v24 = vld [vmem:[#allocation2 + $0xb2] sm:$0xff] }
 0x1eb   : > { %v3215_v39 = vadd.f32 %v3214_v14, %v3213_v5  ;;  %v3110_v15 = vpop.f32.mrf.mxu1  ;;  %v1272_v5 = vld [vmem:[#allocation2 + $0xaa] sm:$0xff]  ;;  %v1265_v14 = vld [vmem:[#allocation2 + $0x52] sm:$0xff] }
 0x1ec   : > { %v3216_v50 = vpop.f32.mrf.mxu0  ;;  %v1299_v16 = vpack.c.bf16 %v1273_v24, %v1272_v5 }
 0x1ed   : > { %v4508_v31 = vadd.f32 %v3215_v39, %v3103_v45  ;;  %v3111_v18 = vpop.f32.mrf.mxu1 }
 0x1ee   : > { %v3112_v29 = vadd.f32 %v3111_v18, %v3110_v15  ;;  %v3217_v59 = vpop.f32.mrf.mxu0  ;;  %v1295_v18 = vpack.c.bf16 %v1265_v14, %v1264_v0 }
 0x1ef   : > { %v3218_v23 = vadd.f32 %v3217_v59, %v3216_v50  ;;  %v3113_v25 = vpop.f32.mrf.mxu1  ;;  %2361 = vmatmul.mubr.bf16.gmra.mxu1 %v1116_v17  ;;  %v1300_v17 = vpack.c.bf16 %v1275_v57, %v1274_v48 }
 0x1f0   : > { %v3219_v34 = vpop.f32.mrf.mxu0  ;;  %2514 = vmatmul.mubr.bf16.gmra.mxu0 %v4415_v60  ;;  %3587 = vmatprep.mubr.bf16.mxu1 %v1296_v10 }
 0x1f1   : > { %v4511_v27 = vadd.f32 %v3218_v23, %v3106_v62  ;;  %v3114_v35 = vpop.f32.mrf.mxu1  ;;  %2521 = vmatprep.mubr.bf16.mxu0 %v1261_v21 }
 0x1f2   : > { %v3115_v58 = vadd.f32 %v3114_v35, %v3113_v25  ;;  %v3220_v40 = vpop.f32.mrf.mxu0  ;;  %v1276_v35 = vld [vmem:[#allocation2 + $0xda] sm:$0xff] }
 0x1f3   : > { %v3221_v32 = vadd.f32 %v3220_v40, %v3219_v34  ;;  %v3116_v41 = vpop.f32.mrf.mxu1 }
 0x1f4   : > { %v3222_v49 = vpop.f32.mrf.mxu0 }
 0x1f5   : > { %v4513_v44 = vadd.f32 %v3221_v32, %v3109_v11  ;;  %v3117_v60 = vpop.f32.mrf.mxu1  ;;  %v1279_v32 = vld [vmem:[#allocation2 + $0xfa] sm:$0xff] }
 0x1f6   : > { %v3118_v45 = vadd.f32 %v3117_v60, %v3116_v41  ;;  %v3223_v46 = vpop.f32.mrf.mxu0  ;;  %v1302_v43 = vpack.c.bf16 %v1279_v32, %v1278_v2 }
 0x1f7   : > { %v3224_v52 = vadd.f32 %v3223_v46, %v3222_v49  ;;  %v3119_v55 = vpop.f32.mrf.mxu1  ;;  %3588 = vmatmul.mubr.bf16.vlgmr.msra.gmra.mxu1 %v1297_v30 }
 0x1f8   : > { %v3225_v42 = vpop.f32.mrf.mxu0  ;;  %2522 = vmatmul.mubr.bf16.gmra.mxu0 %v1213_v1  ;;  %3591 = vmatprep.mubr.bf16.mxu1 %v1298_v33 }
 0x1f9   : > { %v4515_v28 = vadd.f32 %v3224_v52, %v3112_v29  ;;  %3583 = vmatprep.mubr.bf16.mxu0 %v1294_v53  ;;  %v3120_v62 = vpop.f32.mrf.mxu1  ;;  %v1281_v53 = vld [vmem:[#allocation2 + $0x112] sm:$0xff] }
 0x1fa   : > { %v3121_v63 = vadd.f32 %v3120_v62, %v3119_v55  ;;  %v3226_v51 = vpop.f32.mrf.mxu0  ;;  %v1280_v55 = vld [vmem:[#allocation2 + $0x10a] sm:$0xff] }
 0x1fb   : > { %v3227_v36 = vadd.f32 %v3226_v51, %v3225_v42  ;;  %v3122_v11 = vpop.f32.mrf.mxu1  ;;  %v1283_v51 = vld [vmem:[#allocation2 + $0x12a] sm:$0xff] }
 0x1fc   : > { %v3228_v13 = vpop.f32.mrf.mxu0 }
 0x1fd   : > { %v4517_v39 = vadd.f32 %v3227_v36, %v3115_v58  ;;  %v3123_v15 = vpop.f32.mrf.mxu1  ;;  %v1277_v58 = vld [vmem:[#allocation2 + $0xe2] sm:$0xff]  ;;  %v1303_v36 = vpack.c.bf16 %v1281_v53, %v1280_v55 }
 0x1fe   : > { %v3124_v9 = vadd.f32 %v3123_v15, %v3122_v11  ;;  %v3229_v50 = vpop.f32.mrf.mxu0  ;;  %v1301_v49 = vpack.c.bf16 %v1277_v58, %v1276_v35 }
 0x1ff   : > { %v3230_v21 = vadd.f32 %v3229_v50, %v3228_v13  ;;  %v3125_v29 = vpop.f32.mrf.mxu1  ;;  %3592 = vmatmul.mubr.bf16.gmra.mxu1 %v1299_v16 }
 0x200   : > { %v3231_v59 = vpop.f32.mrf.mxu0  ;;  %3584 = vmatmul.mubr.bf16.vlgmr.msra.gmra.mxu0 %v1295_v18  ;;  %3595 = vmatprep.mubr.bf16.mxu1 %v1300_v17  ;;  %v1284_v17 = vld [vmem:[#allocation2 + $0x13a] sm:$0xff] }
 0x201   : > { %v4519_v10 = vadd.f32 %v3230_v21, %v3118_v45  ;;  %v3126_v23 = vpop.f32.mrf.mxu1  ;;  %v1285_v21 = vld [vmem:[#allocation2 + $0x142] sm:$0xff] }
 0x202   : > { %v3127_v25 = vadd.f32 %v3126_v23, %v3125_v29  ;;  %v3232_v34 = vpop.f32.mrf.mxu0  ;;  %v1286_v23 = vld [vmem:[#allocation2 + $0x152] sm:$0xff] }
 0x203   : > { %v3233_v40 = vadd.f32 %v3232_v34, %v3231_v59  ;;  %v3128_v3 = vpop.f32.mrf.mxu1 }
 0x204   : > { %v3234_v41 = vpop.f32.mrf.mxu0 }
 0x205   : > { %v4521_v38 = vadd.f32 %v3233_v40, %v3121_v63  ;;  %v3129_v47 = vpop.f32.mrf.mxu1  ;;  %v1282_v63 = vld [vmem:[#allocation2 + $0x122] sm:$0xff]  ;;  %v1305_v40 = vpack.c.bf16 %v1285_v21, %v1284_v17 }
 0x206   : > { %v3130_v37 = vadd.f32 %v3129_v47, %v3128_v3  ;;  %v3235_v1 = vpop.f32.mrf.mxu0  ;;  %v1304_v48 = vpack.c.bf16 %v1283_v51, %v1282_v63 }
 0x207   : > { %v3236_v26 = vadd.f32 %v3235_v1, %v3234_v41  ;;  %v3131_v60 = vpop.f32.mrf.mxu1  ;;  %3596 = vmatmul.mubr.bf16.gmra.mxu1 %v1301_v49 }
 0x208   : > { %v3237_v30 = vpop.f32.mrf.mxu0  ;;  %3599 = vmatprep.mubr.bf16.mxu1 %v1302_v43 }
 0x209   : > { %v4523_v45 = vadd.f32 %v3236_v26, %v3124_v9  ;;  %v3132_v46 = vpop.f32.mrf.mxu1 }
 0x20a   : > { %v3133_v33 = vadd.f32 %v3132_v46, %v3131_v60  ;;  %v3238_v52 = vpop.f32.mrf.mxu0  ;;  %v1288_v60 = vld [vmem:[#allocation2 + $0x16a] sm:$0xff] }
 0x20b   : > { %v3239_v42 = vadd.f32 %v3238_v52, %v3237_v30  ;;  %v3134_v62 = vpop.f32.mrf.mxu1  ;;  %v1289_v30 = vld [vmem:[#allocation2 + $0x172] sm:$0xff] }
 0x20c   : > { %v3240_v0 = vpop.f32.mrf.mxu0 }
 0x20d   : > { %v4525_v5 = vadd.f32 %v3239_v42, %v3127_v25  ;;  %v3135_v24 = vpop.f32.mrf.mxu1  ;;  %v1287_v25 = vld [vmem:[#allocation2 + $0x15a] sm:$0xff]  ;;  %v1307_v42 = vpack.c.bf16 %v1289_v30, %v1288_v60 }
 0x20e   : > { %v3136_v11 = vadd.f32 %v3135_v24, %v3134_v62  ;;  %v3241_v14 = vpop.f32.mrf.mxu0  ;;  %v1306_v32 = vpack.c.bf16 %v1287_v25, %v1286_v23 }
 0x20f   : > { %v3242_v57 = vadd.f32 %v3241_v14, %v3240_v0  ;;  %v3137_v13 = vpop.f32.mrf.mxu1  ;;  %3600 = vmatmul.mubr.bf16.gmra.mxu1 %v1303_v36  ;;  %v1292_v36 = vld [vmem:[#allocation2 + $0x19a] sm:$0xff] }
 0x210   : > { %v3243_v15 = vpop.f32.mrf.mxu0  ;;  %3603 = vmatprep.mubr.bf16.mxu1 %v1304_v48 }
 0x211   : > { %v4527_v16 = vadd.f32 %v3242_v57, %v3130_v37  ;;  %v3138_v9 = vpop.f32.mrf.mxu1 }
 0x212   : > { %v3139_v50 = vadd.f32 %v3138_v9, %v3137_v13  ;;  %v3244_v18 = vpop.f32.mrf.mxu0 }
 0x213   : > { %v3245_v29 = vadd.f32 %v3244_v18, %v3243_v15  ;;  %v3140_v59 = vpop.f32.mrf.mxu1 }
 0x214   : > { %v3246_v34 = vpop.f32.mrf.mxu0 }
 0x215   : > { %v4529_v35 = vadd.f32 %v3245_v29, %v3133_v33  ;;  %v3141_v58 = vpop.f32.mrf.mxu1 }
 0x216   : > { %v3142_v3 = vadd.f32 %v3141_v58, %v3140_v59  ;;  %v3247_v2 = vpop.f32.mrf.mxu0 }
 0x217   : > { %v3248_v41 = vadd.f32 %v3247_v2, %v3246_v34  ;;  %v3143_v47 = vpop.f32.mrf.mxu1  ;;  %3604 = vmatmul.mubr.bf16.gmra.mxu1 %v1305_v40 }
 0x218   : > { %v3249_v49 = vpop.f32.mrf.mxu0  ;;  %3607 = vmatprep.mubr.bf16.mxu1 %v1306_v32 }
 0x219   : > { %v4531_v37 = vadd.f32 %v3248_v41, %v3136_v11  ;;  %v3144_v1 = vpop.f32.mrf.mxu1  ;;  %v1293_v11 = vld [vmem:[#allocation2 + $0x1a2] sm:$0xff] }
 0x21a   : > { %v3145_v43 = vadd.f32 %v3144_v1, %v3143_v47  ;;  %v3250_v26 = vpop.f32.mrf.mxu0 }
 0x21b   : > { %v3251_v46 = vadd.f32 %v3250_v26, %v3249_v49  ;;  %v3146_v33 = vpop.f32.mrf.mxu1 }
 0x21c   : > { %v3252_v52 = vpop.f32.mrf.mxu0 }
 0x21d   : > { %v4533_v55 = vadd.f32 %v3251_v46, %v3139_v50  ;;  %v3147_v53 = vpop.f32.mrf.mxu1  ;;  %v1309_v50 = vpack.c.bf16 %v1293_v11, %v1292_v36 }
 0x21e   : > { %v3148_v62 = vadd.f32 %v3147_v53, %v3146_v33  ;;  %v3253_v63 = vpop.f32.mrf.mxu0 }
 0x21f   : > { %v3254_v51 = vadd.f32 %v3253_v63, %v3252_v52  ;;  %v3149_v0 = vpop.f32.mrf.mxu1  ;;  %3608 = vmatmul.mubr.bf16.gmra.mxu1 %v1307_v42 }
 0x220   : > { %v3255_v24 = vpop.f32.mrf.mxu0  ;;  %3611 = vmatprep.mubr.bf16.mxu1 %v4500_v12 }
 0x221   : > { %v4536_v14 = vadd.f32 %v3254_v51, %v3142_v3  ;;  %v3150_v48 = vpop.f32.mrf.mxu1 }
 0x222   : > { %v3151_v57 = vadd.f32 %v3150_v48, %v3149_v0  ;;  %v3256_v13 = vpop.f32.mrf.mxu0 }
 0x223   : > { %v3257_v15 = vadd.f32 %v3256_v13, %v3255_v24  ;;  %v3152_v9 = vpop.f32.mrf.mxu1 }
 0x224   : > { %v3258_v18 = vpop.f32.mrf.mxu0 }
 0x225   : > { %v4538_v17 = vadd.f32 %v3257_v15, %v3145_v43  ;;  %v3153_v21 = vpop.f32.mrf.mxu1 }
 0x226   : > { %v3154_v29 = vadd.f32 %v3153_v21, %v3152_v9  ;;  %v3259_v59 = vpop.f32.mrf.mxu0 }
 0x227   : > { %v3260_v23 = vadd.f32 %v3259_v59, %v3258_v18  ;;  %v3155_v25 = vpop.f32.mrf.mxu1  ;;  %3612 = vmatmul.mubr.bf16.gmra.mxu1 %v1309_v50 }
 0x228   : > { %v3261_v12 = vpop.f32.mrf.mxu0 }
 0x229   : > { %v4540_v34 = vadd.f32 %v3260_v23, %v3148_v62  ;;  %v3156_v58 = vpop.f32.mrf.mxu1 }
 0x22a   : > { %v3157_v40 = vadd.f32 %v3156_v58, %v3155_v25  ;;  %v3262_v3 = vpop.f32.mrf.mxu0 }
 0x22b   : > { %v3263_v2 = vadd.f32 %v3262_v3, %v3261_v12  ;;  %v3158_v32 = vpop.f32.mrf.mxu1 }
 0x22c   : > { %v3264_v41 = vpop.f32.mrf.mxu0 }
 0x22d   : > { %v4542_v47 = vadd.f32 %v3263_v2, %v3151_v57  ;;  %v3159_v49 = vpop.f32.mrf.mxu1 }
 0x22e   : > { %v3160_v1 = vadd.f32 %v3159_v49, %v3158_v32  ;;  %v3265_v43 = vpop.f32.mrf.mxu0 }
 0x22f   : > { %v3266_v26 = vadd.f32 %v3265_v43, %v3264_v41  ;;  %v3161_v60 = vpop.f32.mrf.mxu1 }
 0x230   : > { %v3267_v30 = vpop.f32.mrf.mxu0 }
 0x231   : > { %v4544_v46 = vadd.f32 %v3266_v26, %v3154_v29  ;;  %v3162_v33 = vpop.f32.mrf.mxu1 }
 0x232   : > { %v3163_v52 = vadd.f32 %v3162_v33, %v3161_v60  ;;  %v3268_v53 = vpop.f32.mrf.mxu0 }
 0x233   : > { %v3269_v42 = vadd.f32 %v3268_v53, %v3267_v30  ;;  %v3164_v62 = vpop.f32.mrf.mxu1 }
 0x234   : > { %v3270_v63 = vpop.f32.mrf.mxu0 }
 0x235   : > { %v4546_v51 = vadd.f32 %v3269_v42, %v3157_v40  ;;  %v3165_v0 = vpop.f32.mrf.mxu1 }
 0x236   : > { %v3166_v24 = vadd.f32 %v3165_v0, %v3164_v62  ;;  %v3271_v36 = vpop.f32.mrf.mxu0 }
 0x237   : > { %4932 = vst [vmem:[#allocation6_spill] sm:$0xff] %v4546_v51  ;;  %v3272_v11 = vadd.f32 %v3271_v36, %v3270_v63  ;;  %v3295_v48 = vpop.f32.mrf.mxu1 }
 0x238   : > { %v3273_v57 = vpop.f32.mrf.mxu0 }
 0x239   : > { %v4548_v13 = vadd.f32 %v3272_v11, %v3160_v1  ;;  %v3296_v15 = vpop.f32.mrf.mxu1 }
 0x23a   : > { %v3274_v9 = vpop.f32.mrf.mxu0  ;;  %v3297_v50 = vadd.f32 %v3296_v15, %v3295_v48 }
 0x23b   : > { %4933 = vst [vmem:[#allocation7_spill] sm:$0xff] %v4548_v13  ;;  %v3275_v18 = vadd.f32 %v3274_v9, %v3273_v57  ;;  %v3298_v21 = vpop.f32.mrf.mxu1  ;;  %v4700_v13 = vld [vmem:[%s4928_s6] ss:$0 sm:$0xff] }
 0x23c   : > { %v2243_v29 = vadd.f32 %v3297_v50, %v4468_v54  ;;  %v3276_v59 = vpop.f32.mrf.mxu0 }
 0x23d   : > { %v4551_v23 = vadd.f32 %v3275_v18, %v3163_v52  ;;  %v3299_v25 = vpop.f32.mrf.mxu1 }
 0x23e   : > { %v3277_v12 = vpop.f32.mrf.mxu0  ;;  %v3300_v58 = vadd.f32 %v3299_v25, %v3298_v21 }
 0x23f   : > { %4934 = vst [vmem:[#allocation8_spill] sm:$0xff] %v4551_v23  ;;  %v3278_v40 = vadd.f32 %v3277_v12, %v3276_v59  ;;  %v3301_v3 = vpop.f32.mrf.mxu1 }
 0x240   : > { %v2246_v2 = vadd.f32 %v3300_v58, %v4473_v4  ;;  %v3407_v32 = vpop.f32.mrf.mxu0 }
 0x241   : > { %v4554_v41 = vadd.f32 %v3278_v40, %v3166_v24  ;;  %v3302_v49 = vpop.f32.mrf.mxu1 }
 0x242   : > { %v3303_v1 = vadd.f32 %v3302_v49, %v3301_v3  ;;  %v3408_v43 = vpop.f32.mrf.mxu0 }
 0x243   : > { %4935 = vst [vmem:[#allocation9_spill] sm:$0xff] %v4554_v41  ;;  %v3409_v26 = vadd.f32 %v3408_v43, %v3407_v32  ;;  %v3304_v60 = vpop.f32.mrf.mxu1 }
 0x244   : > { %v2251_v54 = vadd.f32 %v3303_v1, %v4476_v8  ;;  %v3410_v30 = vpop.f32.mrf.mxu0 }
 0x245   : > { %v3305_v33 = vpop.f32.mrf.mxu1  ;;  %v4557_v52 = vadd.f32 %v3409_v26, %v2243_v29 }
 0x246   : > { %v3306_v53 = vadd.f32 %v3305_v33, %v3304_v60  ;;  %v3411_v42 = vpop.f32.mrf.mxu0 }
 0x247   : > { %v3412_v62 = vadd.f32 %v3411_v42, %v3410_v30  ;;  %v3307_v63 = vpop.f32.mrf.mxu1 }
 0x248   : > { %v2254_v4 = vadd.f32 %v3306_v53, %v4480_v6  ;;  %v3413_v0 = vpop.f32.mrf.mxu0 }
 0x249   : > { %v3308_v24 = vpop.f32.mrf.mxu1  ;;  %v4560_v36 = vadd.f32 %v3412_v62, %v2246_v2 }
 0x24a   : > { %v3309_v11 = vadd.f32 %v3308_v24, %v3307_v63  ;;  %v3414_v48 = vpop.f32.mrf.mxu0 }
 0x24b   : > { %v3415_v57 = vadd.f32 %v3414_v48, %v3413_v0  ;;  %v3310_v15 = vpop.f32.mrf.mxu1 }
 0x24c   : > { %v2259_v8 = vadd.f32 %v3309_v11, %v4483_v22  ;;  %v3416_v9 = vpop.f32.mrf.mxu0 }
 0x24d   : > { %v3311_v50 = vpop.f32.mrf.mxu1  ;;  %v4563_v18 = vadd.f32 %v3415_v57, %v2251_v54 }
 0x24e   : > { %v3312_v21 = vadd.f32 %v3311_v50, %v3310_v15  ;;  %v3417_v29 = vpop.f32.mrf.mxu0 }
 0x24f   : > { %v3418_v59 = vadd.f32 %v3417_v29, %v3416_v9  ;;  %v3313_v25 = vpop.f32.mrf.mxu1 }
 0x250   : > { %v2262_v6 = vadd.f32 %v3312_v21, %v4488_v20  ;;  %v3419_v12 = vpop.f32.mrf.mxu0 }
 0x251   : > { %v3314_v58 = vpop.f32.mrf.mxu1  ;;  %v4566_v40 = vadd.f32 %v3418_v59, %v2254_v4 }
 0x252   : > { %v3315_v3 = vadd.f32 %v3314_v58, %v3313_v25  ;;  %v3420_v2 = vpop.f32.mrf.mxu0 }
 0x253   : > { %v3421_v32 = vadd.f32 %v3420_v2, %v3419_v12  ;;  %v3316_v49 = vpop.f32.mrf.mxu1 }
 0x254   : > { %v2267_v22 = vadd.f32 %v3315_v3, %v4491_v19  ;;  %v3422_v1 = vpop.f32.mrf.mxu0 }
 0x255   : > { %v3317_v43 = vpop.f32.mrf.mxu1  ;;  %v4569_v26 = vadd.f32 %v3421_v32, %v2259_v8 }
 0x256   : > { %v3318_v60 = vadd.f32 %v3317_v43, %v3316_v49  ;;  %v3423_v54 = vpop.f32.mrf.mxu0 }
 0x257   : > { %v3424_v30 = vadd.f32 %v3423_v54, %v3422_v1  ;;  %v3319_v33 = vpop.f32.mrf.mxu1 }
 0x258   : > { %v2270_v20 = vadd.f32 %v3318_v60, %v4495_v56  ;;  %v3425_v53 = vpop.f32.mrf.mxu0 }
 0x259   : > { %v3320_v42 = vpop.f32.mrf.mxu1  ;;  %v4572_v62 = vadd.f32 %v3424_v30, %v2262_v6 }
 0x25a   : > { %v3321_v63 = vadd.f32 %v3320_v42, %v3319_v33  ;;  %v3426_v4 = vpop.f32.mrf.mxu0 }
 0x25b   : > { %v3427_v0 = vadd.f32 %v3426_v4, %v3425_v53  ;;  %v3322_v24 = vpop.f32.mrf.mxu1 }
 0x25c   : > { %v2275_v19 = vadd.f32 %v3321_v63, %v4498_v61  ;;  %v3428_v11 = vpop.f32.mrf.mxu0 }
 0x25d   : > { %v3323_v48 = vpop.f32.mrf.mxu1  ;;  %v4575_v57 = vadd.f32 %v3427_v0, %v2267_v22 }
 0x25e   : > { %v3324_v15 = vadd.f32 %v3323_v48, %v3322_v24  ;;  %v3429_v8 = vpop.f32.mrf.mxu0 }
 0x25f   : > { %v3430_v9 = vadd.f32 %v3429_v8, %v3428_v11  ;;  %v3325_v50 = vpop.f32.mrf.mxu1 }
 0x260   : > { %v2278_v56 = vadd.f32 %v3324_v15, %v4505_v7  ;;  %v3431_v21 = vpop.f32.mrf.mxu0 }
 0x261   : > { %v3326_v29 = vpop.f32.mrf.mxu1  ;;  %v4578_v59 = vadd.f32 %v3430_v9, %v2270_v20 }
 0x262   : > { %v3327_v25 = vadd.f32 %v3326_v29, %v3325_v50  ;;  %v3432_v6 = vpop.f32.mrf.mxu0 }
 0x263   : > { %v3433_v12 = vadd.f32 %v3432_v6, %v3431_v21  ;;  %v3328_v58 = vpop.f32.mrf.mxu1 }
 0x264   : > { %v2283_v61 = vadd.f32 %v3327_v25, %v4508_v31  ;;  %v3434_v3 = vpop.f32.mrf.mxu0 }
 0x265   : > { %v3329_v2 = vpop.f32.mrf.mxu1  ;;  %v4581_v32 = vadd.f32 %v3433_v12, %v2275_v19 }
 0x266   : > { %v3330_v49 = vadd.f32 %v3329_v2, %v3328_v58  ;;  %v3435_v22 = vpop.f32.mrf.mxu0 }
 0x267   : > { %v3436_v1 = vadd.f32 %v3435_v22, %v3434_v3  ;;  %v3331_v43 = vpop.f32.mrf.mxu1 }
 0x268   : > { %v2286_v7 = vadd.f32 %v3330_v49, %v4511_v27  ;;  %v3437_v60 = vpop.f32.mrf.mxu0 }
 0x269   : > { %v3332_v54 = vpop.f32.mrf.mxu1  ;;  %v4584_v30 = vadd.f32 %v3436_v1, %v2278_v56 }
 0x26a   : > { %v3333_v33 = vadd.f32 %v3332_v54, %v3331_v43  ;;  %v3438_v20 = vpop.f32.mrf.mxu0 }
 0x26b   : > { %v3439_v53 = vadd.f32 %v3438_v20, %v3437_v60  ;;  %v3334_v42 = vpop.f32.mrf.mxu1 }
 0x26c   : > { %v2291_v31 = vadd.f32 %v3333_v33, %v4513_v44  ;;  %v3440_v63 = vpop.f32.mrf.mxu0 }
 0x26d   : > { %v3335_v4 = vpop.f32.mrf.mxu1  ;;  %v4587_v0 = vadd.f32 %v3439_v53, %v2283_v61 }
 0x26e   : > { %v3336_v24 = vadd.f32 %v3335_v4, %v3334_v42  ;;  %v3441_v19 = vpop.f32.mrf.mxu0 }
 0x26f   : > { %v3442_v11 = vadd.f32 %v3441_v19, %v3440_v63  ;;  %v3337_v48 = vpop.f32.mrf.mxu1 }
 0x270   : > { %v2294_v27 = vadd.f32 %v3336_v24, %v4515_v28  ;;  %v3443_v15 = vpop.f32.mrf.mxu0 }
 0x271   : > { %v3338_v8 = vpop.f32.mrf.mxu1  ;;  %v4590_v9 = vadd.f32 %v3442_v11, %v2286_v7 }
 0x272   : > { %v3339_v50 = vadd.f32 %v3338_v8, %v3337_v48  ;;  %v3444_v56 = vpop.f32.mrf.mxu0 }
 0x273   : > { %v3445_v21 = vadd.f32 %v3444_v56, %v3443_v15  ;;  %v3340_v29 = vpop.f32.mrf.mxu1 }
 0x274   : > { %v2299_v44 = vadd.f32 %v3339_v50, %v4517_v39  ;;  %v3446_v25 = vpop.f32.mrf.mxu0 }
 0x275   : > { %v3341_v6 = vpop.f32.mrf.mxu1  ;;  %v4593_v12 = vadd.f32 %v3445_v21, %v2291_v31 }
 0x276   : > { %v3342_v58 = vadd.f32 %v3341_v6, %v3340_v29  ;;  %v3447_v61 = vpop.f32.mrf.mxu0 }
 0x277   : > { %v3448_v3 = vadd.f32 %v3447_v61, %v3446_v25  ;;  %v3343_v2 = vpop.f32.mrf.mxu1 }
 0x278   : > { %v2302_v28 = vadd.f32 %v3342_v58, %v4519_v10  ;;  %v3449_v49 = vpop.f32.mrf.mxu0 }
 0x279   : > { %v3344_v22 = vpop.f32.mrf.mxu1  ;;  %v4596_v1 = vadd.f32 %v3448_v3, %v2294_v27 }
 0x27a   : > { %v3345_v43 = vadd.f32 %v3344_v22, %v3343_v2  ;;  %v3450_v7 = vpop.f32.mrf.mxu0 }
 0x27b   : > { %v3451_v60 = vadd.f32 %v3450_v7, %v3449_v49  ;;  %v3346_v54 = vpop.f32.mrf.mxu1 }
 0x27c   : > { %v2307_v39 = vadd.f32 %v3345_v43, %v4521_v38  ;;  %v3452_v33 = vpop.f32.mrf.mxu0 }
 0x27d   : > { %v3347_v20 = vpop.f32.mrf.mxu1  ;;  %v4599_v53 = vadd.f32 %v3451_v60, %v2299_v44 }
 0x27e   : > { %v3348_v42 = vadd.f32 %v3347_v20, %v3346_v54  ;;  %v3453_v31 = vpop.f32.mrf.mxu0 }
 0x27f   : > { %v3454_v63 = vadd.f32 %v3453_v31, %v3452_v33  ;;  %v3349_v4 = vpop.f32.mrf.mxu1 }
 0x280   : > { %v2310_v10 = vadd.f32 %v3348_v42, %v4523_v45  ;;  %v3455_v24 = vpop.f32.mrf.mxu0 }
 0x281   : > { %v3350_v19 = vpop.f32.mrf.mxu1  ;;  %v4602_v11 = vadd.f32 %v3454_v63, %v2302_v28 }
 0x282   : > { %v3351_v48 = vadd.f32 %v3350_v19, %v3349_v4  ;;  %v3456_v27 = vpop.f32.mrf.mxu0 }
 0x283   : > { %v3457_v15 = vadd.f32 %v3456_v27, %v3455_v24  ;;  %v3352_v8 = vpop.f32.mrf.mxu1 }
 0x284   : > { %v2315_v38 = vadd.f32 %v3351_v48, %v4525_v5  ;;  %v3458_v50 = vpop.f32.mrf.mxu0 }
 0x285   : > { %v3353_v56 = vpop.f32.mrf.mxu1  ;;  %v4605_v21 = vadd.f32 %v3457_v15, %v2307_v39 }
 0x286   : > { %v3354_v29 = vadd.f32 %v3353_v56, %v3352_v8  ;;  %v3459_v44 = vpop.f32.mrf.mxu0 }
 0x287   : > { %v3460_v25 = vadd.f32 %v3459_v44, %v3458_v50  ;;  %v3355_v6 = vpop.f32.mrf.mxu1 }
 0x288   : > { %v2318_v45 = vadd.f32 %v3354_v29, %v4527_v16  ;;  %v3461_v58 = vpop.f32.mrf.mxu0 }
 0x289   : > { %v3356_v61 = vpop.f32.mrf.mxu1  ;;  %v4608_v3 = vadd.f32 %v3460_v25, %v2310_v10 }
 0x28a   : > { %v3357_v2 = vadd.f32 %v3356_v61, %v3355_v6  ;;  %v3462_v28 = vpop.f32.mrf.mxu0 }
 0x28b   : > { %v3463_v49 = vadd.f32 %v3462_v28, %v3461_v58  ;;  %v3358_v22 = vpop.f32.mrf.mxu1 }
 0x28c   : > { %v2323_v5 = vadd.f32 %v3357_v2, %v4529_v35  ;;  %v3464_v43 = vpop.f32.mrf.mxu0 }
 0x28d   : > { %v3359_v7 = vpop.f32.mrf.mxu1  ;;  %v4611_v60 = vadd.f32 %v3463_v49, %v2315_v38 }
 0x28e   : > { %v3360_v54 = vadd.f32 %v3359_v7, %v3358_v22  ;;  %v3465_v39 = vpop.f32.mrf.mxu0 }
 0x28f   : > { %v3466_v33 = vadd.f32 %v3465_v39, %v3464_v43  ;;  %v3361_v20 = vpop.f32.mrf.mxu1 }
 0x290   : > { %v2326_v16 = vadd.f32 %v3360_v54, %v4531_v37  ;;  %v3467_v42 = vpop.f32.mrf.mxu0 }
 0x291   : > { %v3362_v31 = vpop.f32.mrf.mxu1  ;;  %v4614_v63 = vadd.f32 %v3466_v33, %v2318_v45 }
 0x292   : > { %v3363_v4 = vadd.f32 %v3362_v31, %v3361_v20  ;;  %v3468_v10 = vpop.f32.mrf.mxu0 }
 0x293   : > { %v3469_v24 = vadd.f32 %v3468_v10, %v3467_v42  ;;  %v3364_v19 = vpop.f32.mrf.mxu1 }
 0x294   : > { %v4617_v35 = vadd.f32 %v3363_v4, %v4533_v55  ;;  %v3470_v48 = vpop.f32.mrf.mxu0 }
 0x295   : > { %v3365_v27 = vpop.f32.mrf.mxu1  ;;  %v4619_v15 = vadd.f32 %v3469_v24, %v2323_v5 }
 0x296   : > { %v3366_v8 = vadd.f32 %v3365_v27, %v3364_v19  ;;  %v3471_v38 = vpop.f32.mrf.mxu0 }
 0x297   : > { %v3472_v50 = vadd.f32 %v3471_v38, %v3470_v48  ;;  %v3367_v56 = vpop.f32.mrf.mxu1 }
 0x298   : > { %v4622_v37 = vadd.f32 %v3366_v8, %v4536_v14  ;;  %v4624_v29 = vpop.f32.mrf.mxu0 }
 0x299   : > { %v3368_v44 = vpop.f32.mrf.mxu1  ;;  %v4626_v25 = vadd.f32 %v3472_v50, %v2326_v16 }
 0x29a   : > { %v3369_v6 = vadd.f32 %v3368_v44, %v3367_v56  ;;  %v4628_v45 = vpop.f32.mrf.mxu0 }
 0x29b   : > { %v3370_v55 = vpop.f32.mrf.mxu1 }
 0x29c   : > { %v4631_v58 = vadd.f32 %v3369_v6, %v4538_v17  ;;  %v4633_v61 = vpop.f32.mrf.mxu0 }
 0x29d   : > { %v3371_v2 = vpop.f32.mrf.mxu1 }
 0x29e   : > { %v3372_v28 = vadd.f32 %v3371_v2, %v3370_v55  ;;  %v4635_v49 = vpop.f32.mrf.mxu0  ;;  %v4692_v55 = vld [vmem:[%s4927_s5] ss:$0 sm:$0xff] }
 0x29f   : > { %v4637_v14 = vpop.f32.mrf.mxu1 }
 0x2a0   : > { %v4640_v22 = vadd.f32 %v3372_v28, %v4540_v34  ;;  %v4642_v5 = vpop.f32.mrf.mxu0 }
 0x2a1   : > { %v4644_v43 = vpop.f32.mrf.mxu1 }
 0x2a2   : > { %4936 = vst [vmem:[#allocation10_spill] sm:$0xff] %v4640_v22  ;;  %v4646_v7 = vpop.f32.mrf.mxu0 }
 0x2a3   : > { %v4648_v54 = vpop.f32.mrf.mxu1 }
 0x2a4   : > { %v4650_v17 = vpop.f32.mrf.mxu0 }
 0x2a5   : > { %v4652_v39 = vpop.f32.mrf.mxu1 }
 0x2a6   : > { %v4654_v33 = vpop.f32.mrf.mxu0 }
 0x2a7   : > { %v4656_v20 = vpop.f32.mrf.mxu1 }
 0x2a8   : > { %v4658_v16 = vpop.f32.mrf.mxu0 }
 0x2a9   : > { %v4660_v34 = vpop.f32.mrf.mxu1 }
 0x2aa   : > { %v4662_v42 = vpop.f32.mrf.mxu0 }
 0x2ab   : > { %v4664_v31 = vpop.f32.mrf.mxu1 }
 0x2ac   : > { %4937 = vst [vmem:[#allocation11_spill] sm:$0xff] %v4664_v31  ;;  %v4666_v4 = vpop.f32.mrf.mxu0 }
 0x2ad   : > { %v4668_v10 = vpop.f32.mrf.mxu1 }
 0x2ae   : > { %4938 = vst [vmem:[#allocation12_spill] sm:$0xff] %v4668_v10  ;;  %v4670_v24 = vpop.f32.mrf.mxu0 }
 0x2af   : > { %v4672_v19 = vpop.f32.mrf.mxu1 }
 0x2b0   : > { %v4674_v48 = vpop.f32.mrf.mxu0 }
 0x2b1   : > { %4939 = vst [vmem:[#allocation13_spill] sm:$0xff] %v4674_v48  ;;  %v4676_v27 = vpop.f32.mrf.mxu1 }
 0x2b2   : > { %v4678_v8 = vpop.f32.mrf.mxu0 }
 0x2b3   : > { %4940 = vst [vmem:[#allocation14_spill] sm:$0xff] %v4678_v8  ;;  %v4680_v38 = vpop.f32.mrf.mxu1 }
 0x2b4   : > { %4941 = vst [vmem:[#allocation15_spill] sm:$0xff] %v4680_v38  ;;  %v4682_v50 = vpop.f32.mrf.mxu0 }
 0x2b5   : > { %4942 = vst [vmem:[#allocation16_spill] sm:$0xff] %v4682_v50  ;;  %v4684_v56 = vpop.f32.mrf.mxu1 }
 0x2b6   : > { %4943 = vst [vmem:[#allocation17_spill] sm:$0xff] %v4684_v56  ;;  %v4686_v44 = vpop.f32.mrf.mxu0 }
 0x2b7   : > { %4944 = vst [vmem:[#allocation18_spill] sm:$0xff] %v4686_v44  ;;  %v3589_v6 = vpop.f32.mrf.mxu1 }
 0x2b8   : > { %v4694_v2 = vpop.f32.mrf.mxu0  ;;  %v2589_v28 = vadd.f32 %v3589_v6, %v4575_v57 }
 0x2b9   : > { %v2580_v50 = vpop.f32.mrf.mxu1 }
 0x2ba   : > { %v2704_v44 = vmul.f32 %v4692_v55, %v2589_v28  ;;  %v4705_v41 = vpop.f32.mrf.mxu0  ;;  %v2581_v10 = vadd.f32 %v2580_v50, %v4569_v26 }
 0x2bb   : > { %v3590_v31 = vpop.f32.mrf.mxu1 }
 0x2bc   : > { %v2743_v51 = vadd.f32 %v4700_v13, %v2704_v44  ;;  %v2702_v22 = vmul.f32 %v4692_v55, %v2581_v10  ;;  %v4710_v57 = vpop.f32.mrf.mxu0  ;;  %v2592_v6 = vadd.f32 %v3590_v31, %v4578_v59 }
 0x2bd   : > { %v2583_v56 = vpop.f32.mrf.mxu1 }
 0x2be   : > { %v2775_v38 = vmax.f32 %v2743_v51, 0.0  ;;  %v2741_v8 = vadd.f32 %v4700_v13, %v2702_v22  ;;  %v2705_v48 = vmul.f32 %v4692_v55, %v2592_v6  ;;  %v4715_v28 = vpop.f32.mrf.mxu0  ;;  %v2584_v23 = vadd.f32 %v2583_v56, %v4572_v62 }
 0x2bf   : > { %4945 = vst [vmem:[#allocation19_spill] sm:$0xff] %v4715_v28  ;;  %v3593_v26 = vpop.f32.mrf.mxu1 }
 0x2c0   : > { %2807 = vst [vmem:[%s4718_s14 + $0x30] sm:$0xff] %v2775_v38  ;;  %v2773_v10 = vmax.f32 %v2741_v8, 0.0  ;;  %v2744_v59 = vadd.f32 %v4700_v13, %v2705_v48  ;;  %v2703_v51 = vmul.f32 %v4692_v55, %v2584_v23  ;;  %v3585_v31 = vpop.f32.mrf.mxu0  ;;  %v2605_v22 = vadd.f32 %v3593_v26, %v4587_v0 }
 0x2c1   : > { %v2573_v50 = vadd.f32 %v3585_v31, %v4563_v18  ;;  %v2596_v44 = vpop.f32.mrf.mxu1 }
 0x2c2   : > { %2805 = vst [vmem:[%s4718_s14 + $0x20] sm:$0xff] %v2773_v10  ;;  %v2776_v62 = vmax.f32 %v2744_v59, 0.0  ;;  %v2742_v56 = vadd.f32 %v4700_v13, %v2703_v51  ;;  %v2708_v6 = vmul.f32 %v4692_v55, %v2605_v22  ;;  %v2564_v38 = vpop.f32.mrf.mxu0  ;;  %v2597_v8 = vadd.f32 %v2596_v44, %v4581_v32 }
 0x2c3   : > { %v2700_v48 = vmul.f32 %v4692_v55, %v2573_v50  ;;  %v2565_v23 = vadd.f32 %v2564_v38, %v4557_v52  ;;  %v3594_v28 = vpop.f32.mrf.mxu1 }
 0x2c4   : > { %2808 = vst [vmem:[%s4718_s14 + $0x38] sm:$0xff] %v2776_v62  ;;  %v2774_v0 = vmax.f32 %v2742_v56, 0.0  ;;  %v2747_v18 = vadd.f32 %v4700_v13, %v2708_v6  ;;  %v2706_v26 = vmul.f32 %v4692_v55, %v2597_v8  ;;  %v3586_v10 = vpop.f32.mrf.mxu0  ;;  %v2608_v59 = vadd.f32 %v3594_v28, %v4590_v9 }
 0x2c5   : > { %v2739_v51 = vadd.f32 %v4700_v13, %v2700_v48  ;;  %v2698_v31 = vmul.f32 %v4692_v55, %v2565_v23  ;;  %v2576_v32 = vadd.f32 %v3586_v10, %v4566_v40  ;;  %v2599_v22 = vpop.f32.mrf.mxu1 }
 0x2c6   : > { %2806 = vst [vmem:[%s4718_s14 + $0x28] sm:$0xff] %v2774_v0  ;;  %v2779_v52 = vmax.f32 %v2747_v18, 0.0  ;;  %v2745_v50 = vadd.f32 %v4700_v13, %v2706_v26  ;;  %v2709_v44 = vmul.f32 %v4692_v55, %v2608_v59  ;;  %v2567_v62 = vpop.f32.mrf.mxu0  ;;  %v2600_v56 = vadd.f32 %v2599_v22, %v4584_v30 }
 0x2c7   : > { %v2771_v9 = vmax.f32 %v2739_v51, 0.0  ;;  %v2737_v28 = vadd.f32 %v4700_v13, %v2698_v31  ;;  %v2701_v6 = vmul.f32 %v4692_v55, %v2576_v32  ;;  %v2568_v38 = vadd.f32 %v2567_v62, %v4560_v36  ;;  %v3597_v40 = vpop.f32.mrf.mxu1 }
 0x2c8   : > { %2811 = vst [vmem:[%s4718_s14 + $0x50] sm:$0xff] %v2779_v52  ;;  %v2777_v8 = vmax.f32 %v2745_v50, 0.0  ;;  %v2748_v48 = vadd.f32 %v4700_v13, %v2709_v44  ;;  %v2707_v23 = vmul.f32 %v4692_v55, %v2600_v56  ;;  %v2621_v0 = vadd.f32 %v3597_v40, %v4599_v53 }
 0x2c9   : > { %2803 = vst [vmem:[%s4718_s14 + $0x10] sm:$0xff] %v2771_v9  ;;  %v2769_v30 = vmax.f32 %v2737_v28, 0.0  ;;  %v2740_v18 = vadd.f32 %v4700_v13, %v2701_v6  ;;  %v2699_v26 = vmul.f32 %v4692_v55, %v2568_v38  ;;  %v2612_v10 = vpop.f32.mrf.mxu1 }
 0x2ca   : > { %2809 = vst [vmem:[%s4718_s14 + $0x40] sm:$0xff] %v2777_v8  ;;  %v2780_v36 = vmax.f32 %v2748_v48, 0.0  ;;  %v2746_v59 = vadd.f32 %v4700_v13, %v2707_v23  ;;  %v2712_v51 = vmul.f32 %v4692_v55, %v2621_v0  ;;  %v2613_v31 = vadd.f32 %v2612_v10, %v4593_v12 }
 0x2cb   : > { %2801 = vst [vmem:[%s4718_s14] sm:$0xff] %v2769_v30  ;;  %v2772_v32 = vmax.f32 %v2740_v18, 0.0  ;;  %v2738_v53 = vadd.f32 %v4700_v13, %v2699_v26  ;;  %v3598_v22 = vpop.f32.mrf.mxu1  ;;  %v3475_v0 = vadd.f32 %v4628_v45, %v4624_v29  ;;  %v3478_v45 = vadd.f32 %v4635_v49, %v4633_v61 }
 0x2cc   : > { %2812 = vst [vmem:[%s4718_s14 + $0x58] sm:$0xff] %v2780_v36  ;;  %v2778_v52 = vmax.f32 %v2746_v59, 0.0  ;;  %v2751_v50 = vadd.f32 %v4700_v13, %v2712_v51  ;;  %v2710_v44 = vmul.f32 %v4692_v55, %v2613_v31  ;;  %v2624_v62 = vadd.f32 %v3598_v22, %v4602_v11 }
 0x2cd   : > { %2804 = vst [vmem:[%s4718_s14 + $0x18] sm:$0xff] %v2772_v32  ;;  %v2770_v56 = vmax.f32 %v2738_v53, 0.0  ;;  %v2615_v9 = vpop.f32.mrf.mxu1  ;;  %v2492_v32 = vadd.f32 %v3475_v0, %v4617_v35  ;;  %v3387_v0 = vadd.f32 %v4676_v27, %v4672_v19 }
 0x2ce   : > { %2810 = vst [vmem:[%s4718_s14 + $0x48] sm:$0xff] %v2778_v52  ;;  %v2783_v12 = vmax.f32 %v2751_v50, 0.0  ;;  %v2749_v28 = vadd.f32 %v4700_v13, %v2710_v44  ;;  %v2713_v6 = vmul.f32 %v4692_v55, %v2624_v62  ;;  %v2616_v38 = vadd.f32 %v2615_v9, %v4596_v1 }
 0x2cf   : > { %2802 = vst [vmem:[%s4718_s14 + $0x8] sm:$0xff] %v2770_v56  ;;  %v3601_v40 = vpop.f32.mrf.mxu1  ;;  %v3375_v50 = vadd.f32 %v4644_v43, %v4637_v14  ;;  %v3487_v62 = vadd.f32 %v4662_v42, %v4658_v16  ;;  %v2495_v9 = vadd.f32 %v3478_v45, %v4622_v37  ;;  %v3378_v16 = vadd.f32 %v4652_v39, %v4648_v54  ;;  %v4949_v45 = vld [vmem:[#allocation15_spill] sm:$0xff] }
 0x2d0   : > { %2815 = vst [vmem:[%s4718_s14 + $0x70] sm:$0xff] %v2783_v12  ;;  %v2781_v8 = vmax.f32 %v2749_v28, 0.0  ;;  %v2752_v48 = vadd.f32 %v4700_v13, %v2713_v6  ;;  %v2711_v11 = vmul.f32 %v4692_v55, %v2616_v38  ;;  %v2637_v23 = vadd.f32 %v3601_v40, %v4611_v60 }
 0x2d1   : > { %v2628_v30 = vpop.f32.mrf.mxu1  ;;  %v2347_v28 = vadd.f32 %v3375_v50, %v4542_v47  ;;  %v3481_v6 = vadd.f32 %v4646_v7, %v4642_v5  ;;  %v2350_v39 = vadd.f32 %v3378_v16, %v4544_v46  ;;  %v3381_v46 = vadd.f32 %v4660_v34, %v4656_v20  ;;  %v4950_v20 = vld [vmem:[#allocation17_spill] sm:$0xff]  ;;  %v4958_v16 = vld [vmem:[#allocation18_spill] sm:$0xff] }
 0x2d2   : > { %2813 = vst [vmem:[%s4718_s14 + $0x60] sm:$0xff] %v2781_v8  ;;  %v2784_v18 = vmax.f32 %v2752_v48, 0.0  ;;  %v2750_v1 = vadd.f32 %v4700_v13, %v2711_v11  ;;  %v2716_v26 = vmul.f32 %v4692_v55, %v2637_v23  ;;  %v2629_v10 = vadd.f32 %v2628_v30, %v4605_v21 }
 0x2d3   : > { %v3602_v36 = vpop.f32.mrf.mxu1  ;;  %v2508_v47 = vadd.f32 %v3487_v62, %v2347_v28  ;;  %v3484_v23 = vadd.f32 %v4654_v33, %v4650_v17  ;;  %v3390_v34 = vadd.f32 %v4950_v20, %v4949_v45 }
 0x2d4   : > { %2816 = vst [vmem:[%s4718_s14 + $0x78] sm:$0xff] %v2784_v18  ;;  %v2782_v59 = vmax.f32 %v2750_v1, 0.0  ;;  %v2755_v51 = vadd.f32 %v4700_v13, %v2716_v26  ;;  %v2714_v60 = vmul.f32 %v4692_v55, %v2629_v10  ;;  %v2640_v29 = vadd.f32 %v3602_v36, %v4614_v63  ;;  %v4946_v36 = vld [vmem:[#allocation8_spill] sm:$0xff] }
 0x2d5   : > { %v2631_v31 = vpop.f32.mrf.mxu1 }
 0x2d6   : > { %2814 = vst [vmem:[%s4718_s14 + $0x68] sm:$0xff] %v2782_v59  ;;  %v2787_v53 = vmax.f32 %v2755_v51, 0.0  ;;  %v2753_v21 = vadd.f32 %v4700_v13, %v2714_v60  ;;  %v2717_v22 = vmul.f32 %v4692_v55, %v2640_v29  ;;  %v2632_v52 = vadd.f32 %v2631_v31, %v4608_v3  ;;  %v4947_v51 = vld [vmem:[#allocation13_spill] sm:$0xff]  ;;  %v4948_v60 = vld [vmem:[#allocation14_spill] sm:$0xff] }
 0x2d7   : > { %v3605_v44 = vpop.f32.mrf.mxu1  ;;  %v2363_v59 = vadd.f32 %v3387_v0, %v4946_v36  ;;  %v3493_v29 = vadd.f32 %v4948_v60, %v4947_v51 }
 0x2d8   : > { %2819 = vst [vmem:[%s4718_s14 + $0x90] sm:$0xff] %v2787_v53  ;;  %v2785_v63 = vmax.f32 %v2753_v21, 0.0  ;;  %v2756_v61 = vadd.f32 %v4700_v13, %v2717_v22  ;;  %v2715_v35 = vmul.f32 %v4692_v55, %v2632_v52  ;;  %v2653_v49 = vadd.f32 %v3605_v44, %v2492_v32  ;;  %v4952_v52 = vld [vmem:[#allocation6_spill] sm:$0xff]  ;;  %v4953_v44 = vld [vmem:[#allocation11_spill] sm:$0xff] }
 0x2d9   : > { %v2644_v56 = vpop.f32.mrf.mxu1  ;;  %v2355_v50 = vadd.f32 %v3381_v46, %v4952_v52 }
 0x2da   : > { %2817 = vst [vmem:[%s4718_s14 + $0x80] sm:$0xff] %v2785_v63  ;;  %v2788_v3 = vmax.f32 %v2756_v61, 0.0  ;;  %v2754_v14 = vadd.f32 %v4700_v13, %v2715_v35  ;;  %v2720_v43 = vmul.f32 %v4692_v55, %v2653_v49  ;;  %v2645_v12 = vadd.f32 %v2644_v56, %v4619_v15  ;;  %v4954_v63 = vld [vmem:[#allocation12_spill] sm:$0xff]  ;;  %v4955_v35 = vld [vmem:[#allocation19_spill] sm:$0xff] }
 0x2db   : > { %v3606_v42 = vpop.f32.mrf.mxu1  ;;  %v3490_v15 = vadd.f32 %v4670_v24, %v4666_v4  ;;  %v2500_v24 = vadd.f32 %v3481_v6, %v4631_v58  ;;  %v3384_v61 = vadd.f32 %v4954_v63, %v4953_v44  ;;  %v3502_v49 = vadd.f32 %v4955_v35, %v4710_v57  ;;  %v4957_v6 = vld [vmem:[#allocation16_spill] sm:$0xff] }
 0x2dc   : > { %2820 = vst [vmem:[%s4718_s14 + $0x98] sm:$0xff] %v2788_v3  ;;  %v2786_v37 = vmax.f32 %v2754_v14, 0.0  ;;  %v2759_v38 = vadd.f32 %v4700_v13, %v2720_v43  ;;  %v2718_v40 = vmul.f32 %v4692_v55, %v2645_v12  ;;  %v2656_v8 = vadd.f32 %v3606_v42, %v2495_v9  ;;  %v4956_v12 = vld [vmem:[#allocation9_spill] sm:$0xff] }
 0x2dd   : > { %v2647_v48 = vpop.f32.mrf.mxu1  ;;  %v2511_v33 = vadd.f32 %v3490_v15, %v2350_v39  ;;  %v2366_v28 = vadd.f32 %v3390_v34, %v4956_v12  ;;  %v3496_v42 = vadd.f32 %v4958_v16, %v4957_v6 }
 0x2de   : > { %2818 = vst [vmem:[%s4718_s14 + $0x88] sm:$0xff] %v2786_v37  ;;  %v2791_v11 = vmax.f32 %v2759_v38, 0.0  ;;  %v2757_v5 = vadd.f32 %v4700_v13, %v2718_v40  ;;  %v2721_v7 = vmul.f32 %v4692_v55, %v2656_v8  ;;  %v2648_v54 = vadd.f32 %v2647_v48, %v4626_v25  ;;  %v4959_v48 = vld [vmem:[#allocation7_spill] sm:$0xff] }
 0x2df   : > { %v3609_v4 = vpop.f32.mrf.mxu1  ;;  %v3499_v25 = vadd.f32 %v4705_v41, %v4694_v2  ;;  %v4951_v41 = vld [vmem:[#allocation10_spill] sm:$0xff]  ;;  %v2516_v38 = vadd.f32 %v3493_v29, %v2355_v50 }
 0x2e0   : > { %2823 = vst [vmem:[%s4718_s14 + $0xb0] sm:$0xff] %v2791_v11  ;;  %v2789_v30 = vmax.f32 %v2757_v5, 0.0  ;;  %v2760_v18 = vadd.f32 %v4700_v13, %v2721_v7  ;;  %v2719_v1 = vmul.f32 %v4692_v55, %v2648_v54  ;;  %v2669_v26 = vadd.f32 %v3609_v4, %v2508_v47 }
 0x2e1   : > { %v2660_v17 = vpop.f32.mrf.mxu1  ;;  %v2503_v2 = vadd.f32 %v3484_v23, %v4951_v41  ;;  %v2524_v56 = vadd.f32 %v3499_v25, %v2363_v59  ;;  %v2358_v47 = vadd.f32 %v3384_v61, %v4959_v48  ;;  %v2527_v5 = vadd.f32 %v3502_v49, %v2366_v28 }
 0x2e2   : > { %2821 = vst [vmem:[%s4718_s14 + $0xa0] sm:$0xff] %v2789_v30  ;;  %v2792_v19 = vmax.f32 %v2760_v18, 0.0  ;;  %v2758_v58 = vadd.f32 %v4700_v13, %v2719_v1  ;;  %v2724_v27 = vmul.f32 %v4692_v55, %v2669_v26  ;;  %v2661_v10 = vadd.f32 %v2660_v17, %v2500_v24 }
 0x2e3   : > { %v3610_v31 = vpop.f32.mrf.mxu1  ;;  %v2519_v4 = vadd.f32 %v3496_v42, %v2358_v47 }
 0x2e4   : > { %2824 = vst [vmem:[%s4718_s14 + $0xb8] sm:$0xff] %v2792_v19  ;;  %v2790_v32 = vmax.f32 %v2758_v58, 0.0  ;;  %v2763_v53 = vadd.f32 %v4700_v13, %v2724_v27  ;;  %v2722_v21 = vmul.f32 %v4692_v55, %v2661_v10  ;;  %v2672_v22 = vadd.f32 %v3610_v31, %v2511_v33 }
 0x2e5   : > { %v2663_v62 = vpop.f32.mrf.mxu1 }
 0x2e6   : > { %2822 = vst [vmem:[%s4718_s14 + $0xa8] sm:$0xff] %v2790_v32  ;;  %v2795_v9 = vmax.f32 %v2763_v53, 0.0  ;;  %v2761_v3 = vadd.f32 %v4700_v13, %v2722_v21  ;;  %v2725_v14 = vmul.f32 %v4692_v55, %v2672_v22  ;;  %v2664_v43 = vadd.f32 %v2663_v62, %v2503_v2 }
 0x2e7   : > { %v3613_v37 = vpop.f32.mrf.mxu1 }
 0x2e8   : > { %2827 = vst [vmem:[%s4718_s14 + $0xd0] sm:$0xff] %v2795_v9  ;;  %v2793_v57 = vmax.f32 %v2761_v3, 0.0  ;;  %v2764_v40 = vadd.f32 %v4700_v13, %v2725_v14  ;;  %v2723_v8 = vmul.f32 %v4692_v55, %v2664_v43  ;;  %v2685_v15 = vadd.f32 %v3613_v37, %v2524_v56 }
 0x2e9   : > { %v2676_v11 = vpop.f32.mrf.mxu1 }
 0x2ea   : > { %2825 = vst [vmem:[%s4718_s14 + $0xc0] sm:$0xff] %v2793_v57  ;;  %v2796_v7 = vmax.f32 %v2764_v40, 0.0  ;;  %v2762_v54 = vadd.f32 %v4700_v13, %v2723_v8  ;;  %v2728_v39 = vmul.f32 %v4692_v55, %v2685_v15  ;;  %v2677_v23 = vadd.f32 %v2676_v11, %v2516_v38 }
 0x2eb   : > { %v3614_v0 = vpop.f32.mrf.mxu1 }
 0x2ec   : > { %2828 = vst [vmem:[%s4718_s14 + $0xd8] sm:$0xff] %v2796_v7  ;;  %v2794_v24 = vmax.f32 %v2762_v54, 0.0  ;;  %v2767_v30 = vadd.f32 %v4700_v13, %v2728_v39  ;;  %v2726_v18 = vmul.f32 %v4692_v55, %v2677_v23  ;;  %v2688_v1 = vadd.f32 %v3614_v0, %v2527_v5 }
 0x2ed   : > { %v2679_v26 = vpop.f32.mrf.mxu1 }
 0x2ee   : > { %2826 = vst [vmem:[%s4718_s14 + $0xc8] sm:$0xff] %v2794_v24  ;;  %v2799_v46 = vmax.f32 %v2767_v30, 0.0  ;;  %v2765_v25 = vadd.f32 %v4700_v13, %v2726_v18  ;;  %v2729_v17 = vmul.f32 %v4692_v55, %v2688_v1  ;;  %v2680_v33 = vadd.f32 %v2679_v26, %v2519_v4 }
 0x2f0   : > { %2831 = vst [vmem:[%s4718_s14 + $0xf0] sm:$0xff] %v2799_v46  ;;  %v2797_v19 = vmax.f32 %v2765_v25, 0.0  ;;  %v2768_v58 = vadd.f32 %v4700_v13, %v2729_v17  ;;  %v2727_v27 = vmul.f32 %v4692_v55, %v2680_v33 }
 0x2f2   : > { %2829 = vst [vmem:[%s4718_s14 + $0xe0] sm:$0xff] %v2797_v19  ;;  %v2800_v10 = vmax.f32 %v2768_v58, 0.0  ;;  %v2766_v36 = vadd.f32 %v4700_v13, %v2727_v27 }
 0x2f4   : > { %2832 = vst [vmem:[%s4718_s14 + $0xf8] sm:$0xff] %v2800_v10  ;;  %v2798_v59 = vmax.f32 %v2766_v36, 0.0 }
 0x2f6   : > { %2830 = vst [vmem:[%s4718_s14 + $0xe8] sm:$0xff] %v2798_v59 }
 0x2f7   : > { %3780 = shalt.err (!%p3777_p3)
}
 0x2f8   : > { %s3781_s21 = scalar_lea.hbm %s4874_s18, 4096  ;;  %s3785_s9 = scalar_lea.hbm %s4929_s7, 8192 }
 0x2f9   : > { %p3782_p4 = scmp.ne.s32.totalorder %s4874_s18, %s3781_s21  ;;  %p3786_p9 = scmp.lt.s32.totalorder %s4874_s18, %s4929_s7 }
 0x2fa   : > { %p3787_p10 = scmp.lt.s32.totalorder %s3785_s9, %s3781_s21 }
 0x2fb   : > { %p3783_p7 = pnand %p3782_p4, %p3912_p5 }
 0x2fc   : > { %p3788_p11 = por %p3787_p10, %p3786_p9 }
 0x2fd   : > { %p3784_p8 = pneg %p3783_p7 }
 0x2ff   : > { %p3789_p12 = pnand %p3788_p11, %p3784_p8 }
 0x301   : > { %3792 = shalt.err (!%p3789_p12)
}
 0x302   : > { %s3832_s17 = smov 128   ;;  %s3833_s13 = smov 8  }
 0x303   : > { %3632 = dma.vmem_to_hbm [thread:$0]  (%p3912_p5), %s4876_s16, 4096, %s4874_s18, %s4882_s28, %s3832_s17, %s3832_s17, %s3833_s13  }
 0x304 PF: > { %p3638_p13 = scmp.ge.s32.totalorder %s3827_s27, 2  ;;  %s2862_s19 = sand.u32 1, %s3815_s24  }
 0x305   : > { %s2863_s20 = scalar_lea.sflag [#allocation4], %s2862_s19 }
 0x306   : > { %p3635_p0 = pnand %p3638_p13, %p3916_p6 }
 0x308   : > { %p3636_p1 = pneg %p3635_p0 }
 0x30a   : > { %3810 = dma.done.wait (%p3636_p1), %s2863_s20, 4096  }
 0x30b   : > { %3812 = vsyncadd (%p3636_p1), %s2863_s20, 4294963200  ;;  %p17_p2 = scmp.ge.s32.totalorder %s3899_s30, 4   ;;  %s4960_s24 = smov %s3819_s25 }
 0x30c   : > { %s4961_s25 = smov %s3823_s26  ;;  %s4962_s26 = smov %s3910_s10 }
 0x30d   : > { %s4963_s27 = smov %s3899_s30  ;;  %19 = sbr.rel (!%p17_p2) target bundleno = 3 (0x3), region = 85 }
 0x312   :  { %2868 = vsyncpa [#allocation4], 1 }
 0x313   :  { %2870 = vsyncpa [#allocation4 + $0x1], 1 }

</bundles_post_ra>
